<compile_context>
chip_gen: v6e
topology: v6e:2x2x1
jax: 0.10.0
libtpu: 0.0.40
codegen_flags: <defaults>
</compile_context>

<pallas_src>
import jax
import jax.numpy as jnp
from jax import lax
from jax.experimental import pallas as pl
from jax.experimental.pallas import tpu as pltpu


def _make_lm_kernel(num_layers, seq_len, batch, hidden, vocab, matmul_dtype):
    """Builds the Pallas kernel for a fixed (static) configuration."""
    H = hidden

    def kernel(*refs):
        # refs layout:
        #   x_ref                              (seq*batch, emb)
        #   per layer l (3 refs each):
        #       w_ih_T (in_dim, 4H)   w_hh_T (H, 4H)   b_comb (1, 4H)
        #   w_out_T                            (H, vocab)
        #   b_out                              (1, vocab)
        #   out_ref                            (seq*batch, vocab)
        #   buf0, buf1 (scratch VMEM)          (seq*batch, H)
        x_ref = refs[0]
        layer_refs = refs[1:1 + 3 * num_layers]
        w_out_ref = refs[1 + 3 * num_layers]
        b_out_ref = refs[2 + 3 * num_layers]
        out_ref = refs[3 + 3 * num_layers]
        bufs = (refs[4 + 3 * num_layers], refs[5 + 3 * num_layers])

        # hoisted once (JAX does not CSE broadcast_in_dim)
        h0 = jnp.zeros((batch, H), jnp.float32)
        c0 = jnp.zeros((batch, H), jnp.float32)

        # ---- stacked LSTM (PyTorch gate order: i, f, g, o) -------------------
        src = x_ref[...].astype(matmul_dtype)            # (S*B, in_dim)
        for layer in range(num_layers):
            w_ih = layer_refs[3 * layer][...]            # (in_dim, 4H)
            w_hh = layer_refs[3 * layer + 1][...]        # (H, 4H)
            b = layer_refs[3 * layer + 2][...]           # (1, 4H) = b_ih + b_hh
            dst = bufs[layer % 2]

            # Hoisted input projection: all timesteps in one MXU matmul.
            gates_x = (jnp.dot(src, w_ih, preferred_element_type=jnp.float32)
                       + b)                              # (S*B, 4H) f32

            h, c = h0, c0
            for t in range(seq_len):                     # fully unrolled
                r0 = t * batch
                g = gates_x[r0:r0 + batch, :] + jnp.dot(
                    h.astype(matmul_dtype), w_hh,
                    preferred_element_type=jnp.float32)  # (B, 4H)
                # Full-width activations on the EUP, then static lane slices.
                sig = jax.nn.sigmoid(g)
                th = jnp.tanh(g)
                i_g = sig[:, 0 * H:1 * H]
                f_g = sig[:, 1 * H:2 * H]
                g_g = th[:, 2 * H:3 * H]
                o_g = sig[:, 3 * H:4 * H]
                c = f_g * c + i_g * g_g
                h = o_g * jnp.tanh(c)
                dst[r0:r0 + batch, :] = h                # static-offset store
            src = dst[...].astype(matmul_dtype)          # (S*B, H) for next stage

        # ---- fused vocab projection + softmax over dim=1 (batch axis) --------
        w_out = w_out_ref[...]                           # (H, vocab)
        b_out = b_out_ref[...]                           # (1, vocab)
        logits = (jnp.dot(src, w_out, preferred_element_type=jnp.float32)
                  + b_out)                               # (S*B, vocab) f32

        # softmax over the batch axis == over each group of `batch` rows.
        # TODO(synk): for realistic vocab sizes, tile this stage over a seq grid
        # (dimension_semantics=('parallel',)) with >=128-lane vocab tiles instead
        # of keeping w_out / the whole output VMEM-resident (needed on v7x 64MiB).
        for t in range(seq_len):                         # fully unrolled
            r0 = t * batch
            lt = logits[r0:r0 + batch, :]                # (B, vocab)
            m = jnp.max(lt, axis=0, keepdims=True)
            e = jnp.exp(lt - m)
            inv = pl.reciprocal(jnp.sum(e, axis=0, keepdims=True), approx=True)
            out_ref[r0:r0 + batch, :] = e * inv

    return kernel


def lm_forward_pallas(token_seq, embedding, lstm_params, w_out, b_out,
                      matmul_dtype=jnp.float32):
    """token_seq: (seq, batch) int32.  Returns (seq, batch, vocab) float32.

    matmul_dtype: dtype of MXU operands (weights + matmul activations).
    Accumulation (preferred_element_type) and all elementwise math stay f32.
    Use jnp.bfloat16 on v6e/v7x for the bf16-native MXU path.
    """
    # glue: embedding lookup (nn.Embedding.from_pretrained)
    # TODO(synk): fuse the gather into the kernel via PrefetchScalarGridSpec
    # (token ids scalar-prefetched to SMEM + DMA row gather) to avoid the extra
    # HBM round trip of the (S, B, E) activation at large seq/emb.
    x = jnp.take(embedding, token_seq, axis=0).astype(jnp.float32)  # (S, B, E)
    seq_len, batch, emb = x.shape
    hidden = lstm_params[0][1].shape[1]
    vocab = w_out.shape[0]
    num_layers = len(lstm_params)
    sb = seq_len * batch

    inputs = [x.reshape(sb, emb).astype(matmul_dtype)]
    flops = 0
    transcendentals = 0
    in_dim = emb
    for (w_ih, w_hh, b_ih, b_hh) in lstm_params:
        inputs += [w_ih.T.astype(matmul_dtype),                 # (in_dim, 4H)
                   w_hh.T.astype(matmul_dtype),                 # (H, 4H)
                   (b_ih + b_hh).reshape(1, -1).astype(jnp.float32)]
        flops += 2 * sb * in_dim * 4 * hidden + 2 * sb * hidden * 4 * hidden
        transcendentals += sb * (4 * hidden + 4 * hidden + hidden)
        in_dim = hidden
    inputs += [w_out.T.astype(matmul_dtype),                    # (H, vocab)
               b_out.reshape(1, -1).astype(jnp.float32)]
    flops += 2 * sb * hidden * vocab
    transcendentals += sb * vocab

    in_bytes = sum(int(a.size) * a.dtype.itemsize for a in inputs)
    out_bytes = sb * vocab * 4
    scratch_bytes = 2 * sb * hidden * 4
    # everything-resident design: explicit VMEM budget (portable to v7x 64 MiB)
    vmem_limit = int(2 * (in_bytes + out_bytes) + scratch_bytes + (4 << 20))

    kernel = _make_lm_kernel(num_layers, seq_len, batch, hidden, vocab,
                             matmul_dtype)
    vmem_spec = pl.BlockSpec(memory_space=pltpu.MemorySpace.VMEM)
    out_flat = pl.pallas_call(
        kernel,
        out_shape=jax.ShapeDtypeStruct((sb, vocab), jnp.float32),
        in_specs=[vmem_spec] * len(inputs),
        out_specs=vmem_spec,
        scratch_shapes=[pltpu.VMEM((sb, hidden), jnp.float32),
                        pltpu.VMEM((sb, hidden), jnp.float32)],
        compiler_params=pltpu.CompilerParams(vmem_limit_bytes=vmem_limit),
        cost_estimate=pl.CostEstimate(flops=flops,
                                      transcendentals=transcendentals,
                                      bytes_accessed=in_bytes + out_bytes),
    )(*inputs)
    # flat row index = t*batch + b  ->  (seq, batch, vocab) view (C order)
    return out_flat.reshape(seq_len, batch, vocab)


def lm_forward_reference(token_seq, embedding, lstm_params, w_out, b_out):
    """Pure-JAX reference (mirrors the PyTorch forward exactly)."""
    x = jnp.take(embedding, token_seq, axis=0).astype(jnp.float32)
    seq_len, batch, _ = x.shape
    inp = x
    for (w_ih, w_hh, b_ih, b_hh) in lstm_params:
        hid = w_hh.shape[1]

        def step(carry, x_t, w_ih=w_ih, w_hh=w_hh, b_ih=b_ih, b_hh=b_hh):
            h, c = carry
            gates = x_t @ w_ih.T + h @ w_hh.T + b_ih + b_hh
            i, f, g, o = jnp.split(gates, 4, axis=-1)
            i, f, o = jax.nn.sigmoid(i), jax.nn.sigmoid(f), jax.nn.sigmoid(o)
            g = jnp.tanh(g)
            c = f * c + i * g
            h = o * jnp.tanh(c)
            return (h, c), h

        h0 = jnp.zeros((batch, hid), jnp.float32)
        (_, _), inp = lax.scan(step, (h0, h0), inp)
    logits = inp @ w_out.T + b_out
    return jax.nn.softmax(logits, axis=1)  # nn.Softmax(dim=1)


if __name__ == "__main__":
    config = {"num_layers": 2, "embedding": 16, "hidden": 32, "vocab_size": 64}
    seq_len, batch = 8, 2

    key = jax.random.PRNGKey(0)
    keys = jax.random.split(key, 4 + 4 * config["num_layers"])

    # pretrained embedding table (vocab_size, embedding)
    embedding = jax.random.normal(
        keys[0], (config["vocab_size"], config["embedding"]), jnp.float32)

    # LSTM params (PyTorch shapes): per layer (w_ih, w_hh, b_ih, b_hh)
    k = 1.0 / jnp.sqrt(config["hidden"])
    lstm_params = []
    for layer in range(config["num_layers"]):
        in_dim = config["embedding"] if layer == 0 else config["hidden"]
        kw = keys[1 + 4 * layer: 5 + 4 * layer]
        w_ih = jax.random.uniform(kw[0], (4 * config["hidden"], in_dim),
                                  jnp.float32, -k, k)
        w_hh = jax.random.uniform(kw[1], (4 * config["hidden"], config["hidden"]),
                                  jnp.float32, -k, k)
        b_ih = jax.random.uniform(kw[2], (4 * config["hidden"],), jnp.float32, -k, k)
        b_hh = jax.random.uniform(kw[3], (4 * config["hidden"],), jnp.float32, -k, k)
        lstm_params.append((w_ih, w_hh, b_ih, b_hh))

    # convert_vocab Linear: (vocab, hidden) weight, (vocab,) bias
    kl = 1.0 / jnp.sqrt(config["hidden"])
    w_out = jax.random.uniform(keys[-3], (config["vocab_size"], config["hidden"]),
                               jnp.float32, -kl, kl)
    b_out = jax.random.uniform(keys[-2], (config["vocab_size"],),
                               jnp.float32, -kl, kl)

    token_seq = jax.random.randint(keys[-1], (seq_len, batch), 0,
                                   config["vocab_size"], jnp.int32)

    ref = lm_forward_reference(token_seq, embedding, lstm_params, w_out, b_out)
    ref = jax.block_until_ready(ref)

    # f32 MXU-operand mode (exactly mirrors the PyTorch forward)
    prob = lm_forward_pallas(token_seq, embedding, lstm_params, w_out, b_out)
    prob = jax.block_until_ready(prob)
    assert prob.shape == (seq_len, batch, config["vocab_size"])
    assert jnp.allclose(prob, ref, atol=1e-3, rtol=1e-2)

    # bf16 MXU-operand mode (v6e/v7x-friendly; accumulation & elementwise stay f32)
    prob_bf16 = lm_forward_pallas(token_seq, embedding, lstm_params, w_out, b_out,
                                  matmul_dtype=jnp.bfloat16)
    prob_bf16 = jax.block_until_ready(prob_bf16)
    assert jnp.allclose(prob_bf16, ref, atol=2e-2, rtol=5e-2)

    print("KERNEL_OK")
</pallas_src>

<mosaic_0001>
module attributes {stable_mosaic.version = 11 : i64} {
  func.func @kernel(%arg0: memref<16x16xf32, #tpu.memory_space<vmem>>, %arg1: memref<16x128xf32, #tpu.memory_space<vmem>>, %arg2: memref<32x128xf32, #tpu.memory_space<vmem>>, %arg3: memref<1x128xf32, #tpu.memory_space<vmem>>, %arg4: memref<32x128xf32, #tpu.memory_space<vmem>>, %arg5: memref<32x128xf32, #tpu.memory_space<vmem>>, %arg6: memref<1x128xf32, #tpu.memory_space<vmem>>, %arg7: memref<32x64xf32, #tpu.memory_space<vmem>>, %arg8: memref<1x64xf32, #tpu.memory_space<vmem>>, %arg9: memref<16x64xf32, #tpu.memory_space<vmem>>, %arg10: memref<16x32xf32, #tpu.memory_space<vmem>>, %arg11: memref<16x32xf32, #tpu.memory_space<vmem>>) attributes {dimension_semantics = [], scalar_prefetch = 0 : i64, scratch_operands = 2 : i64, tpu.core_type = #tpu.core_type<tc>} {
    %cst = arith.constant 0.000000e+00 : f32
    %0 = vector.broadcast %cst : f32 to vector<2x32xf32>
    %cst_0 = arith.constant 0.000000e+00 : f32
    %1 = vector.broadcast %cst_0 : f32 to vector<2x32xf32>
    %c0 = arith.constant 0 : index
    %c0_1 = arith.constant 0 : index
    %2 = vector.load %arg0[%c0, %c0_1] : memref<16x16xf32, #tpu.memory_space<vmem>>, vector<16x16xf32>
    %c0_2 = arith.constant 0 : index
    %c0_3 = arith.constant 0 : index
    %3 = vector.load %arg1[%c0_2, %c0_3] : memref<16x128xf32, #tpu.memory_space<vmem>>, vector<16x128xf32>
    %c0_4 = arith.constant 0 : index
    %c0_5 = arith.constant 0 : index
    %4 = vector.load %arg2[%c0_4, %c0_5] : memref<32x128xf32, #tpu.memory_space<vmem>>, vector<32x128xf32>
    %c0_6 = arith.constant 0 : index
    %c0_7 = arith.constant 0 : index
    %5 = vector.load %arg3[%c0_6, %c0_7] : memref<1x128xf32, #tpu.memory_space<vmem>>, vector<1x128xf32>
    %cst_8 = arith.constant dense<0.000000e+00> : vector<16x128xf32>
    %6 = tpu.matmul %2, %3, %cst_8 {dimension_numbers = #tpu.dot_dimension_numbers<[1], [0], [0], [1], [0, 0, 1, 1], [], []>} : vector<16x16xf32>, vector<16x128xf32>, vector<16x128xf32> -> vector<16x128xf32>
    %7 = vector.broadcast %5 : vector<1x128xf32> to vector<16x128xf32>
    %8 = arith.addf %6, %7 : vector<16x128xf32>
    %9 = vector.extract_strided_slice %8 {offsets = [0, 0], sizes = [2, 128], strides = [1, 1]} : vector<16x128xf32> to vector<2x128xf32>
    %cst_9 = arith.constant dense<0.000000e+00> : vector<2x128xf32>
    %10 = tpu.matmul %0, %4, %cst_9 {dimension_numbers = #tpu.dot_dimension_numbers<[1], [0], [0], [1], [0, 0, 1, 1], [], []>} : vector<2x32xf32>, vector<32x128xf32>, vector<2x128xf32> -> vector<2x128xf32>
    %11 = arith.addf %9, %10 : vector<2x128xf32>
    %12 = arith.negf %11 : vector<2x128xf32>
    %13 = math.exp %12 : vector<2x128xf32>
    %cst_10 = arith.constant 1.000000e+00 : f32
    %14 = vector.broadcast %cst_10 : f32 to vector<2x128xf32>
    %15 = arith.addf %14, %13 : vector<2x128xf32>
    %16 = arith.divf %14, %15 : vector<2x128xf32>
    %17 = math.tanh %11 : vector<2x128xf32>
    %18 = vector.extract_strided_slice %16 {offsets = [0, 0], sizes = [2, 32], strides = [1, 1]} : vector<2x128xf32> to vector<2x32xf32>
    %19 = vector.extract_strided_slice %16 {offsets = [0, 32], sizes = [2, 32], strides = [1, 1]} : vector<2x128xf32> to vector<2x32xf32>
    %20 = vector.extract_strided_slice %17 {offsets = [0, 64], sizes = [2, 32], strides = [1, 1]} : vector<2x128xf32> to vector<2x32xf32>
    %21 = vector.extract_strided_slice %16 {offsets = [0, 96], sizes = [2, 32], strides = [1, 1]} : vector<2x128xf32> to vector<2x32xf32>
    %22 = arith.mulf %19, %1 : vector<2x32xf32>
    %23 = arith.mulf %18, %20 : vector<2x32xf32>
    %24 = arith.addf %22, %23 : vector<2x32xf32>
    %25 = math.tanh %24 : vector<2x32xf32>
    %26 = arith.mulf %21, %25 : vector<2x32xf32>
    %c0_11 = arith.constant 0 : index
    %c0_12 = arith.constant 0 : index
    %27 = vector.load %arg10[%c0_11, %c0_12] : memref<16x32xf32, #tpu.memory_space<vmem>>, vector<2x32xf32>
    tpu.vector_store %arg10[%c0_11, %c0_12], %26 {strides = array<i32>} : memref<16x32xf32, #tpu.memory_space<vmem>>, vector<2x32xf32>,
    %28 = vector.extract_strided_slice %8 {offsets = [2, 0], sizes = [2, 128], strides = [1, 1]} : vector<16x128xf32> to vector<2x128xf32>
    %cst_13 = arith.constant dense<0.000000e+00> : vector<2x128xf32>
    %29 = tpu.matmul %26, %4, %cst_13 {dimension_numbers = #tpu.dot_dimension_numbers<[1], [0], [0], [1], [0, 0, 1, 1], [], []>} : vector<2x32xf32>, vector<32x128xf32>, vector<2x128xf32> -> vector<2x128xf32>
    %30 = arith.addf %28, %29 : vector<2x128xf32>
    %31 = arith.negf %30 : vector<2x128xf32>
    %32 = math.exp %31 : vector<2x128xf32>
    %cst_14 = arith.constant 1.000000e+00 : f32
    %33 = vector.broadcast %cst_14 : f32 to vector<2x128xf32>
    %34 = arith.addf %33, %32 : vector<2x128xf32>
    %35 = arith.divf %33, %34 : vector<2x128xf32>
    %36 = math.tanh %30 : vector<2x128xf32>
    %37 = vector.extract_strided_slice %35 {offsets = [0, 0], sizes = [2, 32], strides = [1, 1]} : vector<2x128xf32> to vector<2x32xf32>
    %38 = vector.extract_strided_slice %35 {offsets = [0, 32], sizes = [2, 32], strides = [1, 1]} : vector<2x128xf32> to vector<2x32xf32>
    %39 = vector.extract_strided_slice %36 {offsets = [0, 64], sizes = [2, 32], strides = [1, 1]} : vector<2x128xf32> to vector<2x32xf32>
    %40 = vector.extract_strided_slice %35 {offsets = [0, 96], sizes = [2, 32], strides = [1, 1]} : vector<2x128xf32> to vector<2x32xf32>
    %41 = arith.mulf %38, %24 : vector<2x32xf32>
    %42 = arith.mulf %37, %39 : vector<2x32xf32>
    %43 = arith.addf %41, %42 : vector<2x32xf32>
    %44 = math.tanh %43 : vector<2x32xf32>
    %45 = arith.mulf %40, %44 : vector<2x32xf32>
    %c2 = arith.constant 2 : index
    %c0_15 = arith.constant 0 : index
    %46 = vector.load %arg10[%c2, %c0_15] : memref<16x32xf32, #tpu.memory_space<vmem>>, vector<2x32xf32>
    tpu.vector_store %arg10[%c2, %c0_15], %45 {strides = array<i32>} : memref<16x32xf32, #tpu.memory_space<vmem>>, vector<2x32xf32>,
    %47 = vector.extract_strided_slice %8 {offsets = [4, 0], sizes = [2, 128], strides = [1, 1]} : vector<16x128xf32> to vector<2x128xf32>
    %cst_16 = arith.constant dense<0.000000e+00> : vector<2x128xf32>
    %48 = tpu.matmul %45, %4, %cst_16 {dimension_numbers = #tpu.dot_dimension_numbers<[1], [0], [0], [1], [0, 0, 1, 1], [], []>} : vector<2x32xf32>, vector<32x128xf32>, vector<2x128xf32> -> vector<2x128xf32>
    %49 = arith.addf %47, %48 : vector<2x128xf32>
    %50 = arith.negf %49 : vector<2x128xf32>
    %51 = math.exp %50 : vector<2x128xf32>
    %cst_17 = arith.constant 1.000000e+00 : f32
    %52 = vector.broadcast %cst_17 : f32 to vector<2x128xf32>
    %53 = arith.addf %52, %51 : vector<2x128xf32>
    %54 = arith.divf %52, %53 : vector<2x128xf32>
    %55 = math.tanh %49 : vector<2x128xf32>
    %56 = vector.extract_strided_slice %54 {offsets = [0, 0], sizes = [2, 32], strides = [1, 1]} : vector<2x128xf32> to vector<2x32xf32>
    %57 = vector.extract_strided_slice %54 {offsets = [0, 32], sizes = [2, 32], strides = [1, 1]} : vector<2x128xf32> to vector<2x32xf32>
    %58 = vector.extract_strided_slice %55 {offsets = [0, 64], sizes = [2, 32], strides = [1, 1]} : vector<2x128xf32> to vector<2x32xf32>
    %59 = vector.extract_strided_slice %54 {offsets = [0, 96], sizes = [2, 32], strides = [1, 1]} : vector<2x128xf32> to vector<2x32xf32>
    %60 = arith.mulf %57, %43 : vector<2x32xf32>
    %61 = arith.mulf %56, %58 : vector<2x32xf32>
    %62 = arith.addf %60, %61 : vector<2x32xf32>
    %63 = math.tanh %62 : vector<2x32xf32>
    %64 = arith.mulf %59, %63 : vector<2x32xf32>
    %c4 = arith.constant 4 : index
    %c0_18 = arith.constant 0 : index
    %65 = vector.load %arg10[%c4, %c0_18] : memref<16x32xf32, #tpu.memory_space<vmem>>, vector<2x32xf32>
    tpu.vector_store %arg10[%c4, %c0_18], %64 {strides = array<i32>} : memref<16x32xf32, #tpu.memory_space<vmem>>, vector<2x32xf32>,
    %66 = vector.extract_strided_slice %8 {offsets = [6, 0], sizes = [2, 128], strides = [1, 1]} : vector<16x128xf32> to vector<2x128xf32>
    %cst_19 = arith.constant dense<0.000000e+00> : vector<2x128xf32>
    %67 = tpu.matmul %64, %4, %cst_19 {dimension_numbers = #tpu.dot_dimension_numbers<[1], [0], [0], [1], [0, 0, 1, 1], [], []>} : vector<2x32xf32>, vector<32x128xf32>, vector<2x128xf32> -> vector<2x128xf32>
    %68 = arith.addf %66, %67 : vector<2x128xf32>
    %69 = arith.negf %68 : vector<2x128xf32>
    %70 = math.exp %69 : vector<2x128xf32>
    %cst_20 = arith.constant 1.000000e+00 : f32
    %71 = vector.broadcast %cst_20 : f32 to vector<2x128xf32>
    %72 = arith.addf %71, %70 : vector<2x128xf32>
    %73 = arith.divf %71, %72 : vector<2x128xf32>
    %74 = math.tanh %68 : vector<2x128xf32>
    %75 = vector.extract_strided_slice %73 {offsets = [0, 0], sizes = [2, 32], strides = [1, 1]} : vector<2x128xf32> to vector<2x32xf32>
    %76 = vector.extract_strided_slice %73 {offsets = [0, 32], sizes = [2, 32], strides = [1, 1]} : vector<2x128xf32> to vector<2x32xf32>
    %77 = vector.extract_strided_slice %74 {offsets = [0, 64], sizes = [2, 32], strides = [1, 1]} : vector<2x128xf32> to vector<2x32xf32>
    %78 = vector.extract_strided_slice %73 {offsets = [0, 96], sizes = [2, 32], strides = [1, 1]} : vector<2x128xf32> to vector<2x32xf32>
    %79 = arith.mulf %76, %62 : vector<2x32xf32>
    %80 = arith.mulf %75, %77 : vector<2x32xf32>
    %81 = arith.addf %79, %80 : vector<2x32xf32>
    %82 = math.tanh %81 : vector<2x32xf32>
    %83 = arith.mulf %78, %82 : vector<2x32xf32>
    %c6 = arith.constant 6 : index
    %c0_21 = arith.constant 0 : index
    %84 = vector.load %arg10[%c6, %c0_21] : memref<16x32xf32, #tpu.memory_space<vmem>>, vector<2x32xf32>
    tpu.vector_store %arg10[%c6, %c0_21], %83 {strides = array<i32>} : memref<16x32xf32, #tpu.memory_space<vmem>>, vector<2x32xf32>,
    %85 = vector.extract_strided_slice %8 {offsets = [8, 0], sizes = [2, 128], strides = [1, 1]} : vector<16x128xf32> to vector<2x128xf32>
    %cst_22 = arith.constant dense<0.000000e+00> : vector<2x128xf32>
    %86 = tpu.matmul %83, %4, %cst_22 {dimension_numbers = #tpu.dot_dimension_numbers<[1], [0], [0], [1], [0, 0, 1, 1], [], []>} : vector<2x32xf32>, vector<32x128xf32>, vector<2x128xf32> -> vector<2x128xf32>
    %87 = arith.addf %85, %86 : vector<2x128xf32>
    %88 = arith.negf %87 : vector<2x128xf32>
    %89 = math.exp %88 : vector<2x128xf32>
    %cst_23 = arith.constant 1.000000e+00 : f32
    %90 = vector.broadcast %cst_23 : f32 to vector<2x128xf32>
    %91 = arith.addf %90, %89 : vector<2x128xf32>
    %92 = arith.divf %90, %91 : vector<2x128xf32>
    %93 = math.tanh %87 : vector<2x128xf32>
    %94 = vector.extract_strided_slice %92 {offsets = [0, 0], sizes = [2, 32], strides = [1, 1]} : vector<2x128xf32> to vector<2x32xf32>
    %95 = vector.extract_strided_slice %92 {offsets = [0, 32], sizes = [2, 32], strides = [1, 1]} : vector<2x128xf32> to vector<2x32xf32>
    %96 = vector.extract_strided_slice %93 {offsets = [0, 64], sizes = [2, 32], strides = [1, 1]} : vector<2x128xf32> to vector<2x32xf32>
    %97 = vector.extract_strided_slice %92 {offsets = [0, 96], sizes = [2, 32], strides = [1, 1]} : vector<2x128xf32> to vector<2x32xf32>
    %98 = arith.mulf %95, %81 : vector<2x32xf32>
    %99 = arith.mulf %94, %96 : vector<2x32xf32>
    %100 = arith.addf %98, %99 : vector<2x32xf32>
    %101 = math.tanh %100 : vector<2x32xf32>
    %102 = arith.mulf %97, %101 : vector<2x32xf32>
    %c8 = arith.constant 8 : index
    %c0_24 = arith.constant 0 : index
    %103 = vector.load %arg10[%c8, %c0_24] : memref<16x32xf32, #tpu.memory_space<vmem>>, vector<2x32xf32>
    tpu.vector_store %arg10[%c8, %c0_24], %102 {strides = array<i32>} : memref<16x32xf32, #tpu.memory_space<vmem>>, vector<2x32xf32>,
    %104 = vector.extract_strided_slice %8 {offsets = [10, 0], sizes = [2, 128], strides = [1, 1]} : vector<16x128xf32> to vector<2x128xf32>
    %cst_25 = arith.constant dense<0.000000e+00> : vector<2x128xf32>
    %105 = tpu.matmul %102, %4, %cst_25 {dimension_numbers = #tpu.dot_dimension_numbers<[1], [0], [0], [1], [0, 0, 1, 1], [], []>} : vector<2x32xf32>, vector<32x128xf32>, vector<2x128xf32> -> vector<2x128xf32>
    %106 = arith.addf %104, %105 : vector<2x128xf32>
    %107 = arith.negf %106 : vector<2x128xf32>
    %108 = math.exp %107 : vector<2x128xf32>
    %cst_26 = arith.constant 1.000000e+00 : f32
    %109 = vector.broadcast %cst_26 : f32 to vector<2x128xf32>
    %110 = arith.addf %109, %108 : vector<2x128xf32>
    %111 = arith.divf %109, %110 : vector<2x128xf32>
    %112 = math.tanh %106 : vector<2x128xf32>
    %113 = vector.extract_strided_slice %111 {offsets = [0, 0], sizes = [2, 32], strides = [1, 1]} : vector<2x128xf32> to vector<2x32xf32>
    %114 = vector.extract_strided_slice %111 {offsets = [0, 32], sizes = [2, 32], strides = [1, 1]} : vector<2x128xf32> to vector<2x32xf32>
    %115 = vector.extract_strided_slice %112 {offsets = [0, 64], sizes = [2, 32], strides = [1, 1]} : vector<2x128xf32> to vector<2x32xf32>
    %116 = vector.extract_strided_slice %111 {offsets = [0, 96], sizes = [2, 32], strides = [1, 1]} : vector<2x128xf32> to vector<2x32xf32>
    %117 = arith.mulf %114, %100 : vector<2x32xf32>
    %118 = arith.mulf %113, %115 : vector<2x32xf32>
    %119 = arith.addf %117, %118 : vector<2x32xf32>
    %120 = math.tanh %119 : vector<2x32xf32>
    %121 = arith.mulf %116, %120 : vector<2x32xf32>
    %c10 = arith.constant 10 : index
    %c0_27 = arith.constant 0 : index
    %122 = vector.load %arg10[%c10, %c0_27] : memref<16x32xf32, #tpu.memory_space<vmem>>, vector<2x32xf32>
    tpu.vector_store %arg10[%c10, %c0_27], %121 {strides = array<i32>} : memref<16x32xf32, #tpu.memory_space<vmem>>, vector<2x32xf32>,
    %123 = vector.extract_strided_slice %8 {offsets = [12, 0], sizes = [2, 128], strides = [1, 1]} : vector<16x128xf32> to vector<2x128xf32>
    %cst_28 = arith.constant dense<0.000000e+00> : vector<2x128xf32>
    %124 = tpu.matmul %121, %4, %cst_28 {dimension_numbers = #tpu.dot_dimension_numbers<[1], [0], [0], [1], [0, 0, 1, 1], [], []>} : vector<2x32xf32>, vector<32x128xf32>, vector<2x128xf32> -> vector<2x128xf32>
    %125 = arith.addf %123, %124 : vector<2x128xf32>
    %126 = arith.negf %125 : vector<2x128xf32>
    %127 = math.exp %126 : vector<2x128xf32>
    %cst_29 = arith.constant 1.000000e+00 : f32
    %128 = vector.broadcast %cst_29 : f32 to vector<2x128xf32>
    %129 = arith.addf %128, %127 : vector<2x128xf32>
    %130 = arith.divf %128, %129 : vector<2x128xf32>
    %131 = math.tanh %125 : vector<2x128xf32>
    %132 = vector.extract_strided_slice %130 {offsets = [0, 0], sizes = [2, 32], strides = [1, 1]} : vector<2x128xf32> to vector<2x32xf32>
    %133 = vector.extract_strided_slice %130 {offsets = [0, 32], sizes = [2, 32], strides = [1, 1]} : vector<2x128xf32> to vector<2x32xf32>
    %134 = vector.extract_strided_slice %131 {offsets = [0, 64], sizes = [2, 32], strides = [1, 1]} : vector<2x128xf32> to vector<2x32xf32>
    %135 = vector.extract_strided_slice %130 {offsets = [0, 96], sizes = [2, 32], strides = [1, 1]} : vector<2x128xf32> to vector<2x32xf32>
    %136 = arith.mulf %133, %119 : vector<2x32xf32>
    %137 = arith.mulf %132, %134 : vector<2x32xf32>
    %138 = arith.addf %136, %137 : vector<2x32xf32>
    %139 = math.tanh %138 : vector<2x32xf32>
    %140 = arith.mulf %135, %139 : vector<2x32xf32>
    %c12 = arith.constant 12 : index
    %c0_30 = arith.constant 0 : index
    %141 = vector.load %arg10[%c12, %c0_30] : memref<16x32xf32, #tpu.memory_space<vmem>>, vector<2x32xf32>
    tpu.vector_store %arg10[%c12, %c0_30], %140 {strides = array<i32>} : memref<16x32xf32, #tpu.memory_space<vmem>>, vector<2x32xf32>,
    %142 = vector.extract_strided_slice %8 {offsets = [14, 0], sizes = [2, 128], strides = [1, 1]} : vector<16x128xf32> to vector<2x128xf32>
    %cst_31 = arith.constant dense<0.000000e+00> : vector<2x128xf32>
    %143 = tpu.matmul %140, %4, %cst_31 {dimension_numbers = #tpu.dot_dimension_numbers<[1], [0], [0], [1], [0, 0, 1, 1], [], []>} : vector<2x32xf32>, vector<32x128xf32>, vector<2x128xf32> -> vector<2x128xf32>
    %144 = arith.addf %142, %143 : vector<2x128xf32>
    %145 = arith.negf %144 : vector<2x128xf32>
    %146 = math.exp %145 : vector<2x128xf32>
    %cst_32 = arith.constant 1.000000e+00 : f32
    %147 = vector.broadcast %cst_32 : f32 to vector<2x128xf32>
    %148 = arith.addf %147, %146 : vector<2x128xf32>
    %149 = arith.divf %147, %148 : vector<2x128xf32>
    %150 = math.tanh %144 : vector<2x128xf32>
    %151 = vector.extract_strided_slice %149 {offsets = [0, 0], sizes = [2, 32], strides = [1, 1]} : vector<2x128xf32> to vector<2x32xf32>
    %152 = vector.extract_strided_slice %149 {offsets = [0, 32], sizes = [2, 32], strides = [1, 1]} : vector<2x128xf32> to vector<2x32xf32>
    %153 = vector.extract_strided_slice %150 {offsets = [0, 64], sizes = [2, 32], strides = [1, 1]} : vector<2x128xf32> to vector<2x32xf32>
    %154 = vector.extract_strided_slice %149 {offsets = [0, 96], sizes = [2, 32], strides = [1, 1]} : vector<2x128xf32> to vector<2x32xf32>
    %155 = arith.mulf %152, %138 : vector<2x32xf32>
    %156 = arith.mulf %151, %153 : vector<2x32xf32>
    %157 = arith.addf %155, %156 : vector<2x32xf32>
    %158 = math.tanh %157 : vector<2x32xf32>
    %159 = arith.mulf %154, %158 : vector<2x32xf32>
    %c14 = arith.constant 14 : index
    %c0_33 = arith.constant 0 : index
    %160 = vector.load %arg10[%c14, %c0_33] : memref<16x32xf32, #tpu.memory_space<vmem>>, vector<2x32xf32>
    tpu.vector_store %arg10[%c14, %c0_33], %159 {strides = array<i32>} : memref<16x32xf32, #tpu.memory_space<vmem>>, vector<2x32xf32>,
    %c0_34 = arith.constant 0 : index
    %c0_35 = arith.constant 0 : index
    %161 = vector.load %arg10[%c0_34, %c0_35] : memref<16x32xf32, #tpu.memory_space<vmem>>, vector<16x32xf32>
    %c0_36 = arith.constant 0 : index
    %c0_37 = arith.constant 0 : index
    %162 = vector.load %arg4[%c0_36, %c0_37] : memref<32x128xf32, #tpu.memory_space<vmem>>, vector<32x128xf32>
    %c0_38 = arith.constant 0 : index
    %c0_39 = arith.constant 0 : index
    %163 = vector.load %arg5[%c0_38, %c0_39] : memref<32x128xf32, #tpu.memory_space<vmem>>, vector<32x128xf32>
    %c0_40 = arith.constant 0 : index
    %c0_41 = arith.constant 0 : index
    %164 = vector.load %arg6[%c0_40, %c0_41] : memref<1x128xf32, #tpu.memory_space<vmem>>, vector<1x128xf32>
    %cst_42 = arith.constant dense<0.000000e+00> : vector<16x128xf32>
    %165 = tpu.matmul %161, %162, %cst_42 {dimension_numbers = #tpu.dot_dimension_numbers<[1], [0], [0], [1], [0, 0, 1, 1], [], []>} : vector<16x32xf32>, vector<32x128xf32>, vector<16x128xf32> -> vector<16x128xf32>
    %166 = vector.broadcast %164 : vector<1x128xf32> to vector<16x128xf32>
    %167 = arith.addf %165, %166 : vector<16x128xf32>
    %168 = vector.extract_strided_slice %167 {offsets = [0, 0], sizes = [2, 128], strides = [1, 1]} : vector<16x128xf32> to vector<2x128xf32>
    %cst_43 = arith.constant dense<0.000000e+00> : vector<2x128xf32>
    %169 = tpu.matmul %0, %163, %cst_43 {dimension_numbers = #tpu.dot_dimension_numbers<[1], [0], [0], [1], [0, 0, 1, 1], [], []>} : vector<2x32xf32>, vector<32x128xf32>, vector<2x128xf32> -> vector<2x128xf32>
    %170 = arith.addf %168, %169 : vector<2x128xf32>
    %171 = arith.negf %170 : vector<2x128xf32>
    %172 = math.exp %171 : vector<2x128xf32>
    %cst_44 = arith.constant 1.000000e+00 : f32
    %173 = vector.broadcast %cst_44 : f32 to vector<2x128xf32>
    %174 = arith.addf %173, %172 : vector<2x128xf32>
    %175 = arith.divf %173, %174 : vector<2x128xf32>
    %176 = math.tanh %170 : vector<2x128xf32>
    %177 = vector.extract_strided_slice %175 {offsets = [0, 0], sizes = [2, 32], strides = [1, 1]} : vector<2x128xf32> to vector<2x32xf32>
    %178 = vector.extract_strided_slice %175 {offsets = [0, 32], sizes = [2, 32], strides = [1, 1]} : vector<2x128xf32> to vector<2x32xf32>
    %179 = vector.extract_strided_slice %176 {offsets = [0, 64], sizes = [2, 32], strides = [1, 1]} : vector<2x128xf32> to vector<2x32xf32>
    %180 = vector.extract_strided_slice %175 {offsets = [0, 96], sizes = [2, 32], strides = [1, 1]} : vector<2x128xf32> to vector<2x32xf32>
    %181 = arith.mulf %178, %1 : vector<2x32xf32>
    %182 = arith.mulf %177, %179 : vector<2x32xf32>
    %183 = arith.addf %181, %182 : vector<2x32xf32>
    %184 = math.tanh %183 : vector<2x32xf32>
    %185 = arith.mulf %180, %184 : vector<2x32xf32>
    %c0_45 = arith.constant 0 : index
    %c0_46 = arith.constant 0 : index
    %186 = vector.load %arg11[%c0_45, %c0_46] : memref<16x32xf32, #tpu.memory_space<vmem>>, vector<2x32xf32>
    tpu.vector_store %arg11[%c0_45, %c0_46], %185 {strides = array<i32>} : memref<16x32xf32, #tpu.memory_space<vmem>>, vector<2x32xf32>,
    %187 = vector.extract_strided_slice %167 {offsets = [2, 0], sizes = [2, 128], strides = [1, 1]} : vector<16x128xf32> to vector<2x128xf32>
    %cst_47 = arith.constant dense<0.000000e+00> : vector<2x128xf32>
    %188 = tpu.matmul %185, %163, %cst_47 {dimension_numbers = #tpu.dot_dimension_numbers<[1], [0], [0], [1], [0, 0, 1, 1], [], []>} : vector<2x32xf32>, vector<32x128xf32>, vector<2x128xf32> -> vector<2x128xf32>
    %189 = arith.addf %187, %188 : vector<2x128xf32>
    %190 = arith.negf %189 : vector<2x128xf32>
    %191 = math.exp %190 : vector<2x128xf32>
    %cst_48 = arith.constant 1.000000e+00 : f32
    %192 = vector.broadcast %cst_48 : f32 to vector<2x128xf32>
    %193 = arith.addf %192, %191 : vector<2x128xf32>
    %194 = arith.divf %192, %193 : vector<2x128xf32>
    %195 = math.tanh %189 : vector<2x128xf32>
    %196 = vector.extract_strided_slice %194 {offsets = [0, 0], sizes = [2, 32], strides = [1, 1]} : vector<2x128xf32> to vector<2x32xf32>
    %197 = vector.extract_strided_slice %194 {offsets = [0, 32], sizes = [2, 32], strides = [1, 1]} : vector<2x128xf32> to vector<2x32xf32>
    %198 = vector.extract_strided_slice %195 {offsets = [0, 64], sizes = [2, 32], strides = [1, 1]} : vector<2x128xf32> to vector<2x32xf32>
    %199 = vector.extract_strided_slice %194 {offsets = [0, 96], sizes = [2, 32], strides = [1, 1]} : vector<2x128xf32> to vector<2x32xf32>
    %200 = arith.mulf %197, %183 : vector<2x32xf32>
    %201 = arith.mulf %196, %198 : vector<2x32xf32>
    %202 = arith.addf %200, %201 : vector<2x32xf32>
    %203 = math.tanh %202 : vector<2x32xf32>
    %204 = arith.mulf %199, %203 : vector<2x32xf32>
    %c2_49 = arith.constant 2 : index
    %c0_50 = arith.constant 0 : index
    %205 = vector.load %arg11[%c2_49, %c0_50] : memref<16x32xf32, #tpu.memory_space<vmem>>, vector<2x32xf32>
    tpu.vector_store %arg11[%c2_49, %c0_50], %204 {strides = array<i32>} : memref<16x32xf32, #tpu.memory_space<vmem>>, vector<2x32xf32>,
    %206 = vector.extract_strided_slice %167 {offsets = [4, 0], sizes = [2, 128], strides = [1, 1]} : vector<16x128xf32> to vector<2x128xf32>
    %cst_51 = arith.constant dense<0.000000e+00> : vector<2x128xf32>
    %207 = tpu.matmul %204, %163, %cst_51 {dimension_numbers = #tpu.dot_dimension_numbers<[1], [0], [0], [1], [0, 0, 1, 1], [], []>} : vector<2x32xf32>, vector<32x128xf32>, vector<2x128xf32> -> vector<2x128xf32>
    %208 = arith.addf %206, %207 : vector<2x128xf32>
    %209 = arith.negf %208 : vector<2x128xf32>
    %210 = math.exp %209 : vector<2x128xf32>
    %cst_52 = arith.constant 1.000000e+00 : f32
    %211 = vector.broadcast %cst_52 : f32 to vector<2x128xf32>
    %212 = arith.addf %211, %210 : vector<2x128xf32>
    %213 = arith.divf %211, %212 : vector<2x128xf32>
    %214 = math.tanh %208 : vector<2x128xf32>
    %215 = vector.extract_strided_slice %213 {offsets = [0, 0], sizes = [2, 32], strides = [1, 1]} : vector<2x128xf32> to vector<2x32xf32>
    %216 = vector.extract_strided_slice %213 {offsets = [0, 32], sizes = [2, 32], strides = [1, 1]} : vector<2x128xf32> to vector<2x32xf32>
    %217 = vector.extract_strided_slice %214 {offsets = [0, 64], sizes = [2, 32], strides = [1, 1]} : vector<2x128xf32> to vector<2x32xf32>
    %218 = vector.extract_strided_slice %213 {offsets = [0, 96], sizes = [2, 32], strides = [1, 1]} : vector<2x128xf32> to vector<2x32xf32>
    %219 = arith.mulf %216, %202 : vector<2x32xf32>
    %220 = arith.mulf %215, %217 : vector<2x32xf32>
    %221 = arith.addf %219, %220 : vector<2x32xf32>
    %222 = math.tanh %221 : vector<2x32xf32>
    %223 = arith.mulf %218, %222 : vector<2x32xf32>
    %c4_53 = arith.constant 4 : index
    %c0_54 = arith.constant 0 : index
    %224 = vector.load %arg11[%c4_53, %c0_54] : memref<16x32xf32, #tpu.memory_space<vmem>>, vector<2x32xf32>
    tpu.vector_store %arg11[%c4_53, %c0_54], %223 {strides = array<i32>} : memref<16x32xf32, #tpu.memory_space<vmem>>, vector<2x32xf32>,
    %225 = vector.extract_strided_slice %167 {offsets = [6, 0], sizes = [2, 128], strides = [1, 1]} : vector<16x128xf32> to vector<2x128xf32>
    %cst_55 = arith.constant dense<0.000000e+00> : vector<2x128xf32>
    %226 = tpu.matmul %223, %163, %cst_55 {dimension_numbers = #tpu.dot_dimension_numbers<[1], [0], [0], [1], [0, 0, 1, 1], [], []>} : vector<2x32xf32>, vector<32x128xf32>, vector<2x128xf32> -> vector<2x128xf32>
    %227 = arith.addf %225, %226 : vector<2x128xf32>
    %228 = arith.negf %227 : vector<2x128xf32>
    %229 = math.exp %228 : vector<2x128xf32>
    %cst_56 = arith.constant 1.000000e+00 : f32
    %230 = vector.broadcast %cst_56 : f32 to vector<2x128xf32>
    %231 = arith.addf %230, %229 : vector<2x128xf32>
    %232 = arith.divf %230, %231 : vector<2x128xf32>
    %233 = math.tanh %227 : vector<2x128xf32>
    %234 = vector.extract_strided_slice %232 {offsets = [0, 0], sizes = [2, 32], strides = [1, 1]} : vector<2x128xf32> to vector<2x32xf32>
    %235 = vector.extract_strided_slice %232 {offsets = [0, 32], sizes = [2, 32], strides = [1, 1]} : vector<2x128xf32> to vector<2x32xf32>
    %236 = vector.extract_strided_slice %233 {offsets = [0, 64], sizes = [2, 32], strides = [1, 1]} : vector<2x128xf32> to vector<2x32xf32>
    %237 = vector.extract_strided_slice %232 {offsets = [0, 96], sizes = [2, 32], strides = [1, 1]} : vector<2x128xf32> to vector<2x32xf32>
    %238 = arith.mulf %235, %221 : vector<2x32xf32>
    %239 = arith.mulf %234, %236 : vector<2x32xf32>
    %240 = arith.addf %238, %239 : vector<2x32xf32>
    %241 = math.tanh %240 : vector<2x32xf32>
    %242 = arith.mulf %237, %241 : vector<2x32xf32>
    %c6_57 = arith.constant 6 : index
    %c0_58 = arith.constant 0 : index
    %243 = vector.load %arg11[%c6_57, %c0_58] : memref<16x32xf32, #tpu.memory_space<vmem>>, vector<2x32xf32>
    tpu.vector_store %arg11[%c6_57, %c0_58], %242 {strides = array<i32>} : memref<16x32xf32, #tpu.memory_space<vmem>>, vector<2x32xf32>,
    %244 = vector.extract_strided_slice %167 {offsets = [8, 0], sizes = [2, 128], strides = [1, 1]} : vector<16x128xf32> to vector<2x128xf32>
    %cst_59 = arith.constant dense<0.000000e+00> : vector<2x128xf32>
    %245 = tpu.matmul %242, %163, %cst_59 {dimension_numbers = #tpu.dot_dimension_numbers<[1], [0], [0], [1], [0, 0, 1, 1], [], []>} : vector<2x32xf32>, vector<32x128xf32>, vector<2x128xf32> -> vector<2x128xf32>
    %246 = arith.addf %244, %245 : vector<2x128xf32>
    %247 = arith.negf %246 : vector<2x128xf32>
    %248 = math.exp %247 : vector<2x128xf32>
    %cst_60 = arith.constant 1.000000e+00 : f32
    %249 = vector.broadcast %cst_60 : f32 to vector<2x128xf32>
    %250 = arith.addf %249, %248 : vector<2x128xf32>
    %251 = arith.divf %249, %250 : vector<2x128xf32>
    %252 = math.tanh %246 : vector<2x128xf32>
    %253 = vector.extract_strided_slice %251 {offsets = [0, 0], sizes = [2, 32], strides = [1, 1]} : vector<2x128xf32> to vector<2x32xf32>
    %254 = vector.extract_strided_slice %251 {offsets = [0, 32], sizes = [2, 32], strides = [1, 1]} : vector<2x128xf32> to vector<2x32xf32>
    %255 = vector.extract_strided_slice %252 {offsets = [0, 64], sizes = [2, 32], strides = [1, 1]} : vector<2x128xf32> to vector<2x32xf32>
    %256 = vector.extract_strided_slice %251 {offsets = [0, 96], sizes = [2, 32], strides = [1, 1]} : vector<2x128xf32> to vector<2x32xf32>
    %257 = arith.mulf %254, %240 : vector<2x32xf32>
    %258 = arith.mulf %253, %255 : vector<2x32xf32>
    %259 = arith.addf %257, %258 : vector<2x32xf32>
    %260 = math.tanh %259 : vector<2x32xf32>
    %261 = arith.mulf %256, %260 : vector<2x32xf32>
    %c8_61 = arith.constant 8 : index
    %c0_62 = arith.constant 0 : index
    %262 = vector.load %arg11[%c8_61, %c0_62] : memref<16x32xf32, #tpu.memory_space<vmem>>, vector<2x32xf32>
    tpu.vector_store %arg11[%c8_61, %c0_62], %261 {strides = array<i32>} : memref<16x32xf32, #tpu.memory_space<vmem>>, vector<2x32xf32>,
    %263 = vector.extract_strided_slice %167 {offsets = [10, 0], sizes = [2, 128], strides = [1, 1]} : vector<16x128xf32> to vector<2x128xf32>
    %cst_63 = arith.constant dense<0.000000e+00> : vector<2x128xf32>
    %264 = tpu.matmul %261, %163, %cst_63 {dimension_numbers = #tpu.dot_dimension_numbers<[1], [0], [0], [1], [0, 0, 1, 1], [], []>} : vector<2x32xf32>, vector<32x128xf32>, vector<2x128xf32> -> vector<2x128xf32>
    %265 = arith.addf %263, %264 : vector<2x128xf32>
    %266 = arith.negf %265 : vector<2x128xf32>
    %267 = math.exp %266 : vector<2x128xf32>
    %cst_64 = arith.constant 1.000000e+00 : f32
    %268 = vector.broadcast %cst_64 : f32 to vector<2x128xf32>
    %269 = arith.addf %268, %267 : vector<2x128xf32>
    %270 = arith.divf %268, %269 : vector<2x128xf32>
    %271 = math.tanh %265 : vector<2x128xf32>
    %272 = vector.extract_strided_slice %270 {offsets = [0, 0], sizes = [2, 32], strides = [1, 1]} : vector<2x128xf32> to vector<2x32xf32>
    %273 = vector.extract_strided_slice %270 {offsets = [0, 32], sizes = [2, 32], strides = [1, 1]} : vector<2x128xf32> to vector<2x32xf32>
    %274 = vector.extract_strided_slice %271 {offsets = [0, 64], sizes = [2, 32], strides = [1, 1]} : vector<2x128xf32> to vector<2x32xf32>
    %275 = vector.extract_strided_slice %270 {offsets = [0, 96], sizes = [2, 32], strides = [1, 1]} : vector<2x128xf32> to vector<2x32xf32>
    %276 = arith.mulf %273, %259 : vector<2x32xf32>
    %277 = arith.mulf %272, %274 : vector<2x32xf32>
    %278 = arith.addf %276, %277 : vector<2x32xf32>
    %279 = math.tanh %278 : vector<2x32xf32>
    %280 = arith.mulf %275, %279 : vector<2x32xf32>
    %c10_65 = arith.constant 10 : index
    %c0_66 = arith.constant 0 : index
    %281 = vector.load %arg11[%c10_65, %c0_66] : memref<16x32xf32, #tpu.memory_space<vmem>>, vector<2x32xf32>
    tpu.vector_store %arg11[%c10_65, %c0_66], %280 {strides = array<i32>} : memref<16x32xf32, #tpu.memory_space<vmem>>, vector<2x32xf32>,
    %282 = vector.extract_strided_slice %167 {offsets = [12, 0], sizes = [2, 128], strides = [1, 1]} : vector<16x128xf32> to vector<2x128xf32>
    %cst_67 = arith.constant dense<0.000000e+00> : vector<2x128xf32>
    %283 = tpu.matmul %280, %163, %cst_67 {dimension_numbers = #tpu.dot_dimension_numbers<[1], [0], [0], [1], [0, 0, 1, 1], [], []>} : vector<2x32xf32>, vector<32x128xf32>, vector<2x128xf32> -> vector<2x128xf32>
    %284 = arith.addf %282, %283 : vector<2x128xf32>
    %285 = arith.negf %284 : vector<2x128xf32>
    %286 = math.exp %285 : vector<2x128xf32>
    %cst_68 = arith.constant 1.000000e+00 : f32
    %287 = vector.broadcast %cst_68 : f32 to vector<2x128xf32>
    %288 = arith.addf %287, %286 : vector<2x128xf32>
    %289 = arith.divf %287, %288 : vector<2x128xf32>
    %290 = math.tanh %284 : vector<2x128xf32>
    %291 = vector.extract_strided_slice %289 {offsets = [0, 0], sizes = [2, 32], strides = [1, 1]} : vector<2x128xf32> to vector<2x32xf32>
    %292 = vector.extract_strided_slice %289 {offsets = [0, 32], sizes = [2, 32], strides = [1, 1]} : vector<2x128xf32> to vector<2x32xf32>
    %293 = vector.extract_strided_slice %290 {offsets = [0, 64], sizes = [2, 32], strides = [1, 1]} : vector<2x128xf32> to vector<2x32xf32>
    %294 = vector.extract_strided_slice %289 {offsets = [0, 96], sizes = [2, 32], strides = [1, 1]} : vector<2x128xf32> to vector<2x32xf32>
    %295 = arith.mulf %292, %278 : vector<2x32xf32>
    %296 = arith.mulf %291, %293 : vector<2x32xf32>
    %297 = arith.addf %295, %296 : vector<2x32xf32>
    %298 = math.tanh %297 : vector<2x32xf32>
    %299 = arith.mulf %294, %298 : vector<2x32xf32>
    %c12_69 = arith.constant 12 : index
    %c0_70 = arith.constant 0 : index
    %300 = vector.load %arg11[%c12_69, %c0_70] : memref<16x32xf32, #tpu.memory_space<vmem>>, vector<2x32xf32>
    tpu.vector_store %arg11[%c12_69, %c0_70], %299 {strides = array<i32>} : memref<16x32xf32, #tpu.memory_space<vmem>>, vector<2x32xf32>,
    %301 = vector.extract_strided_slice %167 {offsets = [14, 0], sizes = [2, 128], strides = [1, 1]} : vector<16x128xf32> to vector<2x128xf32>
    %cst_71 = arith.constant dense<0.000000e+00> : vector<2x128xf32>
    %302 = tpu.matmul %299, %163, %cst_71 {dimension_numbers = #tpu.dot_dimension_numbers<[1], [0], [0], [1], [0, 0, 1, 1], [], []>} : vector<2x32xf32>, vector<32x128xf32>, vector<2x128xf32> -> vector<2x128xf32>
    %303 = arith.addf %301, %302 : vector<2x128xf32>
    %304 = arith.negf %303 : vector<2x128xf32>
    %305 = math.exp %304 : vector<2x128xf32>
    %cst_72 = arith.constant 1.000000e+00 : f32
    %306 = vector.broadcast %cst_72 : f32 to vector<2x128xf32>
    %307 = arith.addf %306, %305 : vector<2x128xf32>
    %308 = arith.divf %306, %307 : vector<2x128xf32>
    %309 = math.tanh %303 : vector<2x128xf32>
    %310 = vector.extract_strided_slice %308 {offsets = [0, 0], sizes = [2, 32], strides = [1, 1]} : vector<2x128xf32> to vector<2x32xf32>
    %311 = vector.extract_strided_slice %308 {offsets = [0, 32], sizes = [2, 32], strides = [1, 1]} : vector<2x128xf32> to vector<2x32xf32>
    %312 = vector.extract_strided_slice %309 {offsets = [0, 64], sizes = [2, 32], strides = [1, 1]} : vector<2x128xf32> to vector<2x32xf32>
    %313 = vector.extract_strided_slice %308 {offsets = [0, 96], sizes = [2, 32], strides = [1, 1]} : vector<2x128xf32> to vector<2x32xf32>
    %314 = arith.mulf %311, %297 : vector<2x32xf32>
    %315 = arith.mulf %310, %312 : vector<2x32xf32>
    %316 = arith.addf %314, %315 : vector<2x32xf32>
    %317 = math.tanh %316 : vector<2x32xf32>
    %318 = arith.mulf %313, %317 : vector<2x32xf32>
    %c14_73 = arith.constant 14 : index
    %c0_74 = arith.constant 0 : index
    %319 = vector.load %arg11[%c14_73, %c0_74] : memref<16x32xf32, #tpu.memory_space<vmem>>, vector<2x32xf32>
    tpu.vector_store %arg11[%c14_73, %c0_74], %318 {strides = array<i32>} : memref<16x32xf32, #tpu.memory_space<vmem>>, vector<2x32xf32>,
    %c0_75 = arith.constant 0 : index
    %c0_76 = arith.constant 0 : index
    %320 = vector.load %arg11[%c0_75, %c0_76] : memref<16x32xf32, #tpu.memory_space<vmem>>, vector<16x32xf32>
    %c0_77 = arith.constant 0 : index
    %c0_78 = arith.constant 0 : index
    %321 = vector.load %arg7[%c0_77, %c0_78] : memref<32x64xf32, #tpu.memory_space<vmem>>, vector<32x64xf32>
    %c0_79 = arith.constant 0 : index
    %c0_80 = arith.constant 0 : index
    %322 = vector.load %arg8[%c0_79, %c0_80] : memref<1x64xf32, #tpu.memory_space<vmem>>, vector<1x64xf32>
    %cst_81 = arith.constant dense<0.000000e+00> : vector<16x64xf32>
    %323 = tpu.matmul %320, %321, %cst_81 {dimension_numbers = #tpu.dot_dimension_numbers<[1], [0], [0], [1], [0, 0, 1, 1], [], []>} : vector<16x32xf32>, vector<32x64xf32>, vector<16x64xf32> -> vector<16x64xf32>
    %324 = vector.broadcast %322 : vector<1x64xf32> to vector<16x64xf32>
    %325 = arith.addf %323, %324 : vector<16x64xf32>
    %326 = vector.extract_strided_slice %325 {offsets = [0, 0], sizes = [2, 64], strides = [1, 1]} : vector<16x64xf32> to vector<2x64xf32>
    %cst_82 = arith.constant dense<0xFF800000> : vector<64xf32>
    %327 = vector.multi_reduction <maximumf>, %326, %cst_82 [0] : vector<2x64xf32> to vector<64xf32>
    %328 = vector.shape_cast %327 : vector<64xf32> to vector<1x64xf32>
    %329 = vector.broadcast %328 : vector<1x64xf32> to vector<2x64xf32>
    %330 = arith.subf %326, %329 : vector<2x64xf32>
    %331 = math.exp %330 : vector<2x64xf32>
    %cst_83 = arith.constant dense<0.000000e+00> : vector<64xf32>
    %332 = vector.multi_reduction <add>, %331, %cst_83 [0] : vector<2x64xf32> to vector<64xf32>
    %333 = vector.shape_cast %332 : vector<64xf32> to vector<1x64xf32>
    %334 = tpu.reciprocal %333 {approx = true} : vector<1x64xf32> -> vector<1x64xf32>
    %335 = vector.broadcast %334 : vector<1x64xf32> to vector<2x64xf32>
    %336 = arith.mulf %331, %335 : vector<2x64xf32>
    %c0_84 = arith.constant 0 : index
    %c0_85 = arith.constant 0 : index
    %337 = vector.load %arg9[%c0_84, %c0_85] : memref<16x64xf32, #tpu.memory_space<vmem>>, vector<2x64xf32>
    tpu.vector_store %arg9[%c0_84, %c0_85], %336 {strides = array<i32>} : memref<16x64xf32, #tpu.memory_space<vmem>>, vector<2x64xf32>,
    %338 = vector.extract_strided_slice %325 {offsets = [2, 0], sizes = [2, 64], strides = [1, 1]} : vector<16x64xf32> to vector<2x64xf32>
    %cst_86 = arith.constant dense<0xFF800000> : vector<64xf32>
    %339 = vector.multi_reduction <maximumf>, %338, %cst_86 [0] : vector<2x64xf32> to vector<64xf32>
    %340 = vector.shape_cast %339 : vector<64xf32> to vector<1x64xf32>
    %341 = vector.broadcast %340 : vector<1x64xf32> to vector<2x64xf32>
    %342 = arith.subf %338, %341 : vector<2x64xf32>
    %343 = math.exp %342 : vector<2x64xf32>
    %cst_87 = arith.constant dense<0.000000e+00> : vector<64xf32>
    %344 = vector.multi_reduction <add>, %343, %cst_87 [0] : vector<2x64xf32> to vector<64xf32>
    %345 = vector.shape_cast %344 : vector<64xf32> to vector<1x64xf32>
    %346 = tpu.reciprocal %345 {approx = true} : vector<1x64xf32> -> vector<1x64xf32>
    %347 = vector.broadcast %346 : vector<1x64xf32> to vector<2x64xf32>
    %348 = arith.mulf %343, %347 : vector<2x64xf32>
    %c2_88 = arith.constant 2 : index
    %c0_89 = arith.constant 0 : index
    %349 = vector.load %arg9[%c2_88, %c0_89] : memref<16x64xf32, #tpu.memory_space<vmem>>, vector<2x64xf32>
    tpu.vector_store %arg9[%c2_88, %c0_89], %348 {strides = array<i32>} : memref<16x64xf32, #tpu.memory_space<vmem>>, vector<2x64xf32>,
    %350 = vector.extract_strided_slice %325 {offsets = [4, 0], sizes = [2, 64], strides = [1, 1]} : vector<16x64xf32> to vector<2x64xf32>
    %cst_90 = arith.constant dense<0xFF800000> : vector<64xf32>
    %351 = vector.multi_reduction <maximumf>, %350, %cst_90 [0] : vector<2x64xf32> to vector<64xf32>
    %352 = vector.shape_cast %351 : vector<64xf32> to vector<1x64xf32>
    %353 = vector.broadcast %352 : vector<1x64xf32> to vector<2x64xf32>
    %354 = arith.subf %350, %353 : vector<2x64xf32>
    %355 = math.exp %354 : vector<2x64xf32>
    %cst_91 = arith.constant dense<0.000000e+00> : vector<64xf32>
    %356 = vector.multi_reduction <add>, %355, %cst_91 [0] : vector<2x64xf32> to vector<64xf32>
    %357 = vector.shape_cast %356 : vector<64xf32> to vector<1x64xf32>
    %358 = tpu.reciprocal %357 {approx = true} : vector<1x64xf32> -> vector<1x64xf32>
    %359 = vector.broadcast %358 : vector<1x64xf32> to vector<2x64xf32>
    %360 = arith.mulf %355, %359 : vector<2x64xf32>
    %c4_92 = arith.constant 4 : index
    %c0_93 = arith.constant 0 : index
    %361 = vector.load %arg9[%c4_92, %c0_93] : memref<16x64xf32, #tpu.memory_space<vmem>>, vector<2x64xf32>
    tpu.vector_store %arg9[%c4_92, %c0_93], %360 {strides = array<i32>} : memref<16x64xf32, #tpu.memory_space<vmem>>, vector<2x64xf32>,
    %362 = vector.extract_strided_slice %325 {offsets = [6, 0], sizes = [2, 64], strides = [1, 1]} : vector<16x64xf32> to vector<2x64xf32>
    %cst_94 = arith.constant dense<0xFF800000> : vector<64xf32>
    %363 = vector.multi_reduction <maximumf>, %362, %cst_94 [0] : vector<2x64xf32> to vector<64xf32>
    %364 = vector.shape_cast %363 : vector<64xf32> to vector<1x64xf32>
    %365 = vector.broadcast %364 : vector<1x64xf32> to vector<2x64xf32>
    %366 = arith.subf %362, %365 : vector<2x64xf32>
    %367 = math.exp %366 : vector<2x64xf32>
    %cst_95 = arith.constant dense<0.000000e+00> : vector<64xf32>
    %368 = vector.multi_reduction <add>, %367, %cst_95 [0] : vector<2x64xf32> to vector<64xf32>
    %369 = vector.shape_cast %368 : vector<64xf32> to vector<1x64xf32>
    %370 = tpu.reciprocal %369 {approx = true} : vector<1x64xf32> -> vector<1x64xf32>
    %371 = vector.broadcast %370 : vector<1x64xf32> to vector<2x64xf32>
    %372 = arith.mulf %367, %371 : vector<2x64xf32>
    %c6_96 = arith.constant 6 : index
    %c0_97 = arith.constant 0 : index
    %373 = vector.load %arg9[%c6_96, %c0_97] : memref<16x64xf32, #tpu.memory_space<vmem>>, vector<2x64xf32>
    tpu.vector_store %arg9[%c6_96, %c0_97], %372 {strides = array<i32>} : memref<16x64xf32, #tpu.memory_space<vmem>>, vector<2x64xf32>,
    %374 = vector.extract_strided_slice %325 {offsets = [8, 0], sizes = [2, 64], strides = [1, 1]} : vector<16x64xf32> to vector<2x64xf32>
    %cst_98 = arith.constant dense<0xFF800000> : vector<64xf32>
    %375 = vector.multi_reduction <maximumf>, %374, %cst_98 [0] : vector<2x64xf32> to vector<64xf32>
    %376 = vector.shape_cast %375 : vector<64xf32> to vector<1x64xf32>
    %377 = vector.broadcast %376 : vector<1x64xf32> to vector<2x64xf32>
    %378 = arith.subf %374, %377 : vector<2x64xf32>
    %379 = math.exp %378 : vector<2x64xf32>
    %cst_99 = arith.constant dense<0.000000e+00> : vector<64xf32>
    %380 = vector.multi_reduction <add>, %379, %cst_99 [0] : vector<2x64xf32> to vector<64xf32>
    %381 = vector.shape_cast %380 : vector<64xf32> to vector<1x64xf32>
    %382 = tpu.reciprocal %381 {approx = true} : vector<1x64xf32> -> vector<1x64xf32>
    %383 = vector.broadcast %382 : vector<1x64xf32> to vector<2x64xf32>
    %384 = arith.mulf %379, %383 : vector<2x64xf32>
    %c8_100 = arith.constant 8 : index
    %c0_101 = arith.constant 0 : index
    %385 = vector.load %arg9[%c8_100, %c0_101] : memref<16x64xf32, #tpu.memory_space<vmem>>, vector<2x64xf32>
    tpu.vector_store %arg9[%c8_100, %c0_101], %384 {strides = array<i32>} : memref<16x64xf32, #tpu.memory_space<vmem>>, vector<2x64xf32>,
    %386 = vector.extract_strided_slice %325 {offsets = [10, 0], sizes = [2, 64], strides = [1, 1]} : vector<16x64xf32> to vector<2x64xf32>
    %cst_102 = arith.constant dense<0xFF800000> : vector<64xf32>
    %387 = vector.multi_reduction <maximumf>, %386, %cst_102 [0] : vector<2x64xf32> to vector<64xf32>
    %388 = vector.shape_cast %387 : vector<64xf32> to vector<1x64xf32>
    %389 = vector.broadcast %388 : vector<1x64xf32> to vector<2x64xf32>
    %390 = arith.subf %386, %389 : vector<2x64xf32>
    %391 = math.exp %390 : vector<2x64xf32>
    %cst_103 = arith.constant dense<0.000000e+00> : vector<64xf32>
    %392 = vector.multi_reduction <add>, %391, %cst_103 [0] : vector<2x64xf32> to vector<64xf32>
    %393 = vector.shape_cast %392 : vector<64xf32> to vector<1x64xf32>
    %394 = tpu.reciprocal %393 {approx = true} : vector<1x64xf32> -> vector<1x64xf32>
    %395 = vector.broadcast %394 : vector<1x64xf32> to vector<2x64xf32>
    %396 = arith.mulf %391, %395 : vector<2x64xf32>
    %c10_104 = arith.constant 10 : index
    %c0_105 = arith.constant 0 : index
    %397 = vector.load %arg9[%c10_104, %c0_105] : memref<16x64xf32, #tpu.memory_space<vmem>>, vector<2x64xf32>
    tpu.vector_store %arg9[%c10_104, %c0_105], %396 {strides = array<i32>} : memref<16x64xf32, #tpu.memory_space<vmem>>, vector<2x64xf32>,
    %398 = vector.extract_strided_slice %325 {offsets = [12, 0], sizes = [2, 64], strides = [1, 1]} : vector<16x64xf32> to vector<2x64xf32>
    %cst_106 = arith.constant dense<0xFF800000> : vector<64xf32>
    %399 = vector.multi_reduction <maximumf>, %398, %cst_106 [0] : vector<2x64xf32> to vector<64xf32>
    %400 = vector.shape_cast %399 : vector<64xf32> to vector<1x64xf32>
    %401 = vector.broadcast %400 : vector<1x64xf32> to vector<2x64xf32>
    %402 = arith.subf %398, %401 : vector<2x64xf32>
    %403 = math.exp %402 : vector<2x64xf32>
    %cst_107 = arith.constant dense<0.000000e+00> : vector<64xf32>
    %404 = vector.multi_reduction <add>, %403, %cst_107 [0] : vector<2x64xf32> to vector<64xf32>
    %405 = vector.shape_cast %404 : vector<64xf32> to vector<1x64xf32>
    %406 = tpu.reciprocal %405 {approx = true} : vector<1x64xf32> -> vector<1x64xf32>
    %407 = vector.broadcast %406 : vector<1x64xf32> to vector<2x64xf32>
    %408 = arith.mulf %403, %407 : vector<2x64xf32>
    %c12_108 = arith.constant 12 : index
    %c0_109 = arith.constant 0 : index
    %409 = vector.load %arg9[%c12_108, %c0_109] : memref<16x64xf32, #tpu.memory_space<vmem>>, vector<2x64xf32>
    tpu.vector_store %arg9[%c12_108, %c0_109], %408 {strides = array<i32>} : memref<16x64xf32, #tpu.memory_space<vmem>>, vector<2x64xf32>,
    %410 = vector.extract_strided_slice %325 {offsets = [14, 0], sizes = [2, 64], strides = [1, 1]} : vector<16x64xf32> to vector<2x64xf32>
    %cst_110 = arith.constant dense<0xFF800000> : vector<64xf32>
    %411 = vector.multi_reduction <maximumf>, %410, %cst_110 [0] : vector<2x64xf32> to vector<64xf32>
    %412 = vector.shape_cast %411 : vector<64xf32> to vector<1x64xf32>
    %413 = vector.broadcast %412 : vector<1x64xf32> to vector<2x64xf32>
    %414 = arith.subf %410, %413 : vector<2x64xf32>
    %415 = math.exp %414 : vector<2x64xf32>
    %cst_111 = arith.constant dense<0.000000e+00> : vector<64xf32>
    %416 = vector.multi_reduction <add>, %415, %cst_111 [0] : vector<2x64xf32> to vector<64xf32>
    %417 = vector.shape_cast %416 : vector<64xf32> to vector<1x64xf32>
    %418 = tpu.reciprocal %417 {approx = true} : vector<1x64xf32> -> vector<1x64xf32>
    %419 = vector.broadcast %418 : vector<1x64xf32> to vector<2x64xf32>
    %420 = arith.mulf %415, %419 : vector<2x64xf32>
    %c14_112 = arith.constant 14 : index
    %c0_113 = arith.constant 0 : index
    %421 = vector.load %arg9[%c14_112, %c0_113] : memref<16x64xf32, #tpu.memory_space<vmem>>, vector<2x64xf32>
    tpu.vector_store %arg9[%c14_112, %c0_113], %420 {strides = array<i32>} : memref<16x64xf32, #tpu.memory_space<vmem>>, vector<2x64xf32>,
    return
  }
}

</mosaic_0001>

<bundles_post_ra>
// kernel: tpu_custom_call.1
= control target key start
LH: loop header
LB: loop body
LE: loop exit
PB: predicated region body
PF: predicated region fallthrough
CT: control target
= control target key end

     0   :  { %14 = vsyncpa [#allocation5], 0  ;;  %s3545_s0 = inlined_call_operand.hbm [shape: f32[16,16], index: 0, kind: input, shape index: {}]   ;;  %s3546_s1 = inlined_call_operand.hbm [shape: f32[16,128], index: 1, kind: input, shape index: {}]   ;;  %s3547_s2 = inlined_call_operand.hbm [shape: f32[32,128], index: 2, kind: input, shape index: {}]   ;;  %s3548_s3 = inlined_call_operand.vmem [shape: f32[1,128], index: 3, kind: input, shape index: {}]   ;;  %s3549_s4 = inlined_call_operand.hbm [shape: f32[32,128], index: 4, kind: input, shape index: {}]   ;;  %s3550_s5 = inlined_call_operand.hbm [shape: f32[32,128], index: 5, kind: input, shape index: {}]   ;;  %s3551_s6 = inlined_call_operand.vmem [shape: f32[1,128], index: 6, kind: input, shape index: {}]   ;;  %s3552_s7 = inlined_call_operand.hbm [shape: f32[32,64], index: 7, kind: input, shape index: {}]   ;;  %s3553_s8 = inlined_call_operand.vmem [shape: f32[1,64], index: 8, kind: input, shape index: {}]   ;;  %s3554_s9 = inlined_call_operand.hbm [shape: f32[16,64], index: 9, kind: output, shape index: {}]  }
   0x1   :  { %15 = vsyncpa [#allocation8], 0 }
   0x2   :  { %16 = vsyncpa [#allocation11], 0 }
   0x3   :  { %17 = vsyncpa [#allocation14], 0 }
   0x4   :  { %18 = vsyncpa [#allocation6], 0  ;;  %s3013_s30 = smov [#allocation7]   ;;  %s3014_s11 = smov [#allocation10]  }
   0x5   :  { %s36_s10 = sshll.u32 %s3013_s30, 4  ;;  %s62_s12 = sshll.u32 %s3014_s11, 4  ;;  %s37_s10 = int_to_ptr.vmem [resolvable:$true] %s36_s10  ;;  %s63_s12 = int_to_ptr.vmem [resolvable:$true] %s62_s12 }
   0x6   :  { %s2871_s13 = scalar_lea.vmem %s37_s10, 256  ;;  %p2876_p1 = scmp.lt.s32.totalorder %s37_s10, %s37_s10 }
   0x7   :  { %p2872_p0 = scmp.ne.s32.totalorder %s37_s10, %s2871_s13  ;;  %p2877_p2 = scmp.lt.s32.totalorder %s2871_s13, %s2871_s13 }
   0x9   :  { %p2878_p3 = por %p2877_p2, %p2876_p1 }
   0xb   :  { %p2879_p4 = pnand %p2878_p3, %p2872_p0 }
   0xd   :  { %2882 = shalt.err (!%p2879_p4)
}
   0xe   :  { %s3015_s14 = smov 128   ;;  %s3016_s15 = smov 8  }
   0xf   :  { %42 = dma.hbm_to_vmem [thread:$0]  %s3546_s1, 256, %s37_s10, [#allocation8], %s3015_s14, %s3015_s14, %s3016_s15  }
  0x10   :  { %s2891_s18 = scalar_lea.vmem %s63_s12, 512  ;;  %p2896_p6 = scmp.lt.s32.totalorder %s63_s12, %s63_s12 }
  0x11   :  { %p2892_p5 = scmp.ne.s32.totalorder %s63_s12, %s2891_s18  ;;  %p2897_p7 = scmp.lt.s32.totalorder %s2891_s18, %s2891_s18 }
  0x13   :  { %p2898_p8 = por %p2897_p7, %p2896_p6 }
  0x15   :  { %p2899_p9 = pnand %p2898_p8, %p2892_p5 }
  0x17   :  { %2902 = shalt.err (!%p2899_p9)
}
  0x18   :  { %68 = dma.hbm_to_vmem [thread:$0]  %s3549_s4, 512, %s63_s12, [#allocation11], %s3015_s14, %s3015_s14, %s3016_s15  }
  0x19   :  { %s3017_s21 = smov [#allocation4]   ;;  %s3018_s23 = smov [#allocation9]  }
  0x1a   :  { %s24_s22 = sshll.u32 %s3017_s21, 4  ;;  %s48_s24 = sshll.u32 %s3018_s23, 4  ;;  %s25_s22 = int_to_ptr.vmem [resolvable:$true] %s24_s22  ;;  %s49_s24 = int_to_ptr.vmem [resolvable:$true] %s48_s24 }
  0x1b   :  { %s2911_s1 = scalar_lea.vmem %s25_s22, 256  ;;  %p2916_p11 = scmp.lt.s32.totalorder %s25_s22, %s25_s22 }
  0x1c   :  { %p2912_p10 = scmp.ne.s32.totalorder %s25_s22, %s2911_s1  ;;  %p2917_p12 = scmp.lt.s32.totalorder %s2911_s1, %s2911_s1 }
  0x1e   :  { %p2918_p13 = por %p2917_p12, %p2916_p11 }
  0x20   :  { %p2919_p0 = pnand %p2918_p13, %p2912_p10 }
  0x22   :  { %2922 = shalt.err (!%p2919_p0)
}
  0x23   :  { %30 = dma.hbm_to_vmem [thread:$0]  %s3545_s0, 256, %s25_s22, [#allocation5], %s3015_s14, %s3015_s14, %s3016_s15  }
  0x24   :  { %s2931_s4 = scalar_lea.vmem %s49_s24, 512  ;;  %p2936_p2 = scmp.lt.s32.totalorder %s49_s24, %s49_s24 }
  0x25   :  { %p2932_p1 = scmp.ne.s32.totalorder %s49_s24, %s2931_s4  ;;  %p2937_p3 = scmp.lt.s32.totalorder %s2931_s4, %s2931_s4 }
  0x27   :  { %p2938_p4 = por %p2937_p3, %p2936_p2 }
  0x29   :  { %p2939_p5 = pnand %p2938_p4, %p2932_p1 }
  0x2b   :  { %2942 = shalt.err (!%p2939_p5)
}
  0x2c   :  { %54 = dma.hbm_to_vmem [thread:$0]  %s3547_s2, 512, %s49_s24, [#allocation8], %s3015_s14, %s3015_s14, %s3016_s15  }
  0x2d   :  { %s3019_s29 = smov [#allocation12]   ;;  %s3020_s10 = smov [#allocation13]  }
  0x2e   :  { %s74_s30 = sshll.u32 %s3019_s29, 4  ;;  %s88_s11 = sshll.u32 %s3020_s10, 4  ;;  %s75_s30 = int_to_ptr.vmem [resolvable:$true] %s74_s30  ;;  %s89_s11 = int_to_ptr.vmem [resolvable:$true] %s88_s11 }
  0x2f   :  { %s2951_s0 = scalar_lea.vmem %s75_s30, 512  ;;  %p2956_p7 = scmp.lt.s32.totalorder %s75_s30, %s75_s30 }
  0x30   :  { %p2952_p6 = scmp.ne.s32.totalorder %s75_s30, %s2951_s0  ;;  %p2957_p8 = scmp.lt.s32.totalorder %s2951_s0, %s2951_s0 }
  0x32   :  { %p2958_p9 = por %p2957_p8, %p2956_p7 }
  0x34   :  { %p2959_p10 = pnand %p2958_p9, %p2952_p6 }
  0x36   :  { %2962 = shalt.err (!%p2959_p10)
}
  0x37   :  { %80 = dma.hbm_to_vmem [thread:$0]  %s3550_s5, 512, %s75_s30, [#allocation11], %s3015_s14, %s3015_s14, %s3016_s15  }
  0x38   :  { %s2971_s2 = scalar_lea.vmem %s89_s11, 512  ;;  %p2976_p12 = scmp.lt.s32.totalorder %s89_s11, %s89_s11 }
  0x39   :  { %p2972_p11 = scmp.ne.s32.totalorder %s89_s11, %s2971_s2  ;;  %p2977_p13 = scmp.lt.s32.totalorder %s2971_s2, %s2971_s2 }
  0x3b   :  { %p2978_p0 = por %p2977_p13, %p2976_p12 }
  0x3d   :  { %p2979_p1 = pnand %p2978_p0, %p2972_p11 }
  0x3f   :  { %2982 = shalt.err (!%p2979_p1)
}
  0x40   :  { %94 = dma.hbm_to_vmem [thread:$0]  %s3552_s7, 512, %s89_s11, [#allocation14], %s3015_s14, %s3015_s14, %s3016_s15  }
  0x41   :  { %3003 = dma.done.wait [#allocation5], 256  }
  0x42   :  { %3004 = vsyncadd [#allocation5], 4294967040 }
  0x43   :  { %3005 = dma.done.wait [#allocation8], 768  }
  0x44   :  { %3006 = vsyncadd [#allocation8], 4294966528 }
  0x45   :  { %3007 = dma.done.wait [#allocation11], 1024  }
  0x46   :  { %3008 = vsyncadd [#allocation11], 4294966272 }
  0x47   :  { %3009 = dma.done.wait [#allocation14], 512  }
  0x48   :  { %3010 = vsyncadd [#allocation14], 4294966784  ;;  %v3021_v0 = vmov 0.0   ;;  %vm3022_vm0 = vmmov 0   ;;  %v118_v1 = vld [vmem:[#allocation7 + $0x8] sm:$0xff]  ;;  %v117_v3 = vld [vmem:[#allocation7] sm:$0xff] }
  0x49   :  { %2492 = vmatprep.subr.mxu1 %v3021_v0  ;;  %2500 = vmatprep.mubr.msk.f32.mxu1 %vm3022_vm0, %v3021_v0  ;;  %v3115_v2 = vld [vmem:[#allocation9 + $0x18] sm:$0xff]  ;;  %v3118_v4 = vld [vmem:[#allocation9 + $0x10] sm:$0xff]  ;;  %v115_v5 = vld [vmem:[#allocation4] sm:$0xff]  ;;  %vm130_vm1 = vcmask 130048   ;;  %s3023_s18 = smov 64   ;;  %vm315_vm2 = vcmask 254976  }
  0x4a   :  { %2485 = vmatprep.subr.mxu0 %v118_v1  ;;  %2493 = vmatpush3.msra.mxu1 %v3115_v2  ;;  %v116_v6 = vld [vmem:[#allocation4 + $0x8] sm:$0xff]  ;;  %v3125_v8 = vld [vmem:[#allocation9] sm:$0xff]  ;;  %vm212_vm3 = vcmask 261120   ;;  %vm424_vm4 = vcmask 257026   ;;  %vm648_vm5 = vcmask 261126   ;;  %vm536_vm6 = vcmask 259076  }
  0x4b   :  { %2486 = vmatpush3.msra.mxu0 %v118_v1  ;;  %2494 = vmatprep.subr.mxu1 %v3021_v0  ;;  %v3122_v7 = vld [vmem:[#allocation9 + $0x8] sm:$0xff]  ;;  %v2350_v9 = vld [vmem:[%s3548_s3] ss:$0 sm:$0xff]  ;;  %s3024_s3 = smov 32   ;;  %vm2148_vm7 = vcmask 517120   ;;  %vm2169_vm8 = vcmask 519170  }
  0x4c   :  { %2487 = vmatprep.subr.mxu0 %v117_v3  ;;  %2495 = vmatpush3.msra.mxu1 %v3118_v4  ;;  %vm2193_vm9 = vcmask 521220   ;;  %vm2217_vm10 = vcmask 523270  }
  0x4d   :  { %2488 = vmatpush3.msra.mxu0 %v117_v3  ;;  %2489 = vmatprep.mubr.msk.f32.mxu0 %vm130_vm1, %v115_v5 }
  0x4e   :  { %2496 = vmatprep.subr.mxu1 %v3021_v0  ;;  %2490 = vmatmul.mubr.msk.f32.vlgmr.msra.gmra.mxu0 %vm130_vm1, %v116_v6 }
  0x4f   :  { %2497 = vmatpush3.msra.mxu1 %v3122_v7  ;;  %2503 = vmatprep.subr.mxu0 %v3021_v0 }
  0x50   :  { %2498 = vmatprep.subr.mxu1 %v3021_v0  ;;  %2504 = vmatpush3.msra.mxu0 %v3115_v2 }
  0x51   :  { %2499 = vmatpush3.msra.mxu1 %v3125_v8  ;;  %2505 = vmatprep.subr.mxu0 %v3021_v0 }
  0x52   :  { %2501 = vmatmul.mubr.f32.vlgmr.msra.gmra.mxu1 %v3021_v0  ;;  %2506 = vmatpush3.msra.mxu0 %v3118_v4 }
  0x53   :  { %2507 = vmatprep.subr.mxu0 %v3021_v0  ;;  %2511 = vmatprep.mubr.msk.f32.mxu0 %vm3022_vm0, %v3021_v0 }
  0x54   :  { %2508 = vmatpush3.msra.mxu0 %v3122_v7  ;;  %2514 = vmatprep.subr.mxu1 %v3021_v0 }
  0x55   :  { %2509 = vmatprep.subr.mxu0 %v3021_v0  ;;  %2515 = vmatpush3.msra.mxu1 %v3115_v2 }
  0x56   :  { %2510 = vmatpush3.msra.mxu0 %v3125_v8  ;;  %2516 = vmatprep.subr.mxu1 %v3021_v0 }
  0x57   :  { %2517 = vmatpush3.msra.mxu1 %v3118_v4  ;;  %2522 = vmatprep.mubr.msk.f32.mxu1 %vm3022_vm0, %v3021_v0 }
  0x58   :  { %2518 = vmatprep.subr.mxu1 %v3021_v0  ;;  %2525 = vmatprep.subr.mxu0 %v3021_v0 }
  0x59   :  { %2519 = vmatpush3.msra.mxu1 %v3122_v7 }
  0x5a   :  { %2520 = vmatprep.subr.mxu1 %v3021_v0 }
  0x5b   :  { %2521 = vmatpush3.msra.mxu1 %v3125_v8 }
  0x5c   :  { %2536 = vmatprep.subr.mxu1 %v3021_v0 }
 0x10e   :  { %v2491_v10 = vpop.f32.mrf.mxu0 }
 0x10f   :  { %v3156_v11 = vadd.f32 %v2491_v10, %v2350_v9 }
 0x110   :  { %v203_v12 = vpop.f32.mrf.mxu0 }
 0x111   :  { %v3158_v13 = vadd.f32 %v2350_v9, %v203_v12 }
 0x112   :  { %v282_v14 = vpop.f32.mrf.mxu1 }
 0x113   :  { %v286_v15 = vadd.f32 %v282_v14, %v3158_v13 }
 0x114   :  { %v2502_v16 = vpop.f32.mrf.mxu1 }
 0x115   :  { %2703 = vtanh.f32 %v286_v15  ;;  %v2353_v18 = vmul.f32 -1.442695, %v286_v15 }
 0x117   :  { %2705 = vpow2.f32 %v2353_v18 }
 0x122   :  { %v2704_v17 = vpop.eup %2703 }
 0x123   :  { %296 = vrot.lane.b32.xlu0 %v2704_v17, %s3023_s18 }
 0x124   :  { %v2706_v19 = vpop.eup %2705 }
 0x125   :  { %v290_v20 = vadd.f32 1.0, %v2706_v19 }
 0x127   :  { %2707 = vrcp.f32 %v290_v20 }
 0x134   :  { %v2708_v21 = vpop.eup %2707 }
 0x135   :  { %v294_v24 = vmul.f32 0.0, %v2708_v21 }
 0x195   :  { %v297_v22 = vpop.permute.xlu0 %296 }
 0x196   :  { %v299_v23 = vmul.f32 %v2708_v21, %v297_v22 }
 0x198   :  { %301 = vrot.lane.b32.xlu0 %v299_v23, %s3024_s3 }
 0x20a   :  { %v302_v25 = vpop.permute.xlu0 %301 }
 0x20b   :  { %v304_v26 = vadd.f32 %v302_v25, %v294_v24 }
 0x20d   :  { %2709 = vtanh.f32 %v304_v26  ;;  %v401_v42 = vrot.slane %v304_v26, 6 }
 0x21a   :  { %v2710_v27 = vpop.eup %2709 }
 0x21b   :  { %307 = vrot.lane.b32.xlu1 %v2710_v27, %s3023_s18 }
 0x28d   :  { %v308_v28 = vpop.permute.xlu1 %307 }
 0x28e   :  { %v310_v29 = vmul.f32 %v2708_v21, %v308_v28 }
 0x290   :  { %312 = vrot.lane.b32.xlu1 %v310_v29, %s3024_s3 }
 0x302   :  { %v313_v30 = vpop.permute.xlu1 %312 }
 0x303   :  { %316 = vst.msk [vmem:[#allocation2] sm:$0x3] %vm315_vm2, %v313_v30  ;;  %2512 = vmatmul.mubr.msk.f32.vlgmr.msra.gmra.mxu0 %vm212_vm3, %v313_v30 }
 0x304   :  { %2526 = vmatpush3.msra.mxu0 %v3115_v2  ;;  %2533 = vmatprep.mubr.msk.f32.mxu0 %vm3022_vm0, %v3021_v0 }
 0x305   :  { %2527 = vmatprep.subr.mxu0 %v3021_v0 }
 0x306   :  { %2528 = vmatpush3.msra.mxu0 %v3118_v4 }
 0x307   :  { %2529 = vmatprep.subr.mxu0 %v3021_v0 }
 0x308   :  { %2530 = vmatpush3.msra.mxu0 %v3122_v7 }
 0x309   :  { %2531 = vmatprep.subr.mxu0 %v3021_v0 }
 0x30a   :  { %2532 = vmatpush3.msra.mxu0 %v3125_v8 }
 0x30b   :  { %2547 = vmatprep.subr.mxu0 %v3021_v0 }
 0x3c3   :  { %v385_v31 = vpop.f32.mrf.mxu0 }
 0x3c4   :  { %v390_v32 = vrot.slane %v385_v31, 6 }
 0x3c5   :  { %v2513_v33 = vpop.f32.mrf.mxu0 }
 0x3c6   :  { %v392_v34 = vadd.f32 %v390_v32, %v3158_v13 }
 0x3c8   :  { %2711 = vtanh.f32 %v392_v34  ;;  %v2355_v36 = vmul.f32 -1.442695, %v392_v34 }
 0x3ca   :  { %2713 = vpow2.f32 %v2355_v36 }
 0x3d5   :  { %v2712_v35 = vpop.eup %2711 }
 0x3d6   :  { %405 = vrot.lane.b32.xlu0 %v2712_v35, %s3023_s18 }
 0x3d7   :  { %v2714_v37 = vpop.eup %2713 }
 0x3d8   :  { %v396_v38 = vadd.f32 1.0, %v2714_v37 }
 0x3da   :  { %2715 = vrcp.f32 %v396_v38 }
 0x3e7   :  { %v2716_v39 = vpop.eup %2715 }
 0x3e8   :  { %v403_v43 = vmul.f32 %v2716_v39, %v401_v42 }
 0x448   :  { %v406_v40 = vpop.permute.xlu0 %405 }
 0x449   :  { %v408_v41 = vmul.f32 %v2716_v39, %v406_v40 }
 0x44b   :  { %410 = vrot.lane.b32.xlu1 %v408_v41, %s3024_s3 }
 0x4bd   :  { %v411_v44 = vpop.permute.xlu1 %410 }
 0x4be   :  { %v413_v45 = vadd.f32 %v411_v44, %v403_v43 }
 0x4c0   :  { %2717 = vtanh.f32 %v413_v45  ;;  %v513_v62 = vrot.slane %v413_v45, 6 }
 0x4cd   :  { %v2718_v46 = vpop.eup %2717 }
 0x4ce   :  { %416 = vrot.lane.b32.xlu0 %v2718_v46, %s3023_s18 }
 0x540   :  { %v417_v47 = vpop.permute.xlu0 %416 }
 0x541   :  { %v3181_v48 = vmul.f32 %v2716_v39, %v417_v47 }
 0x543   :  { %v426_v49 = vrot.slane %v3181_v48, 2 }
 0x545   :  { %427 = vrot.lane.b32.xlu1 %v426_v49, %s3024_s3 }
 0x5b7   :  { %v428_v50 = vpop.permute.xlu1 %427 }
 0x5b8   :  { %2523 = vmatmul.mubr.msk.f32.vlgmr.msra.gmra.mxu1 %vm212_vm3, %v428_v50 }
 0x5b9   :  { %2537 = vmatpush3.msra.mxu1 %v3115_v2  ;;  %2544 = vmatprep.mubr.msk.f32.mxu1 %vm3022_vm0, %v3021_v0 }
 0x5ba   :  { %2538 = vmatprep.subr.mxu1 %v3021_v0 }
 0x5bb   :  { %2539 = vmatpush3.msra.mxu1 %v3118_v4 }
 0x5bc   :  { %2540 = vmatprep.subr.mxu1 %v3021_v0 }
 0x5bd   :  { %2541 = vmatpush3.msra.mxu1 %v3122_v7 }
 0x5be   :  { %2542 = vmatprep.subr.mxu1 %v3021_v0 }
 0x5bf   :  { %2543 = vmatpush3.msra.mxu1 %v3125_v8 }
 0x5c0   :  { %2558 = vmatprep.subr.mxu1 %v3021_v0 }
 0x678   :  { %v497_v51 = vpop.f32.mrf.mxu1 }
 0x679   :  { %v502_v52 = vrot.slane %v497_v51, 4 }
 0x67a   :  { %v2524_v53 = vpop.f32.mrf.mxu1 }
 0x67b   :  { %v504_v54 = vadd.f32 %v502_v52, %v3158_v13 }
 0x67d   :  { %2719 = vtanh.f32 %v504_v54  ;;  %v2357_v56 = vmul.f32 -1.442695, %v504_v54 }
 0x67f   :  { %2721 = vpow2.f32 %v2357_v56 }
 0x68a   :  { %v2720_v55 = vpop.eup %2719 }
 0x68b   :  { %517 = vrot.lane.b32.xlu0 %v2720_v55, %s3023_s18 }
 0x68c   :  { %v2722_v57 = vpop.eup %2721 }
 0x68d   :  { %v508_v58 = vadd.f32 1.0, %v2722_v57 }
 0x68f   :  { %2723 = vrcp.f32 %v508_v58 }
 0x69c   :  { %v2724_v59 = vpop.eup %2723 }
 0x69d   :  { %v515_v63 = vmul.f32 %v2724_v59, %v513_v62 }
 0x6fd   :  { %v518_v60 = vpop.permute.xlu0 %517 }
 0x6fe   :  { %v520_v61 = vmul.f32 %v2724_v59, %v518_v60 }
 0x700   :  { %522 = vrot.lane.b32.xlu1 %v520_v61, %s3024_s3 }
 0x772   :  { %v523_v1 = vpop.permute.xlu1 %522 }
 0x773   :  { %v525_v3 = vadd.f32 %v523_v1, %v515_v63 }
 0x775   :  { %2725 = vtanh.f32 %v525_v3  ;;  %v625_v25 = vrot.slane %v525_v3, 6 }
 0x782   :  { %v2726_v5 = vpop.eup %2725 }
 0x783   :  { %528 = vrot.lane.b32.xlu0 %v2726_v5, %s3023_s18 }
 0x7f5   :  { %v529_v6 = vpop.permute.xlu0 %528 }
 0x7f6   :  { %v3200_v9 = vmul.f32 %v2724_v59, %v529_v6 }
 0x7f8   :  { %v538_v10 = vrot.slane %v3200_v9, 4 }
 0x7fa   :  { %539 = vrot.lane.b32.xlu1 %v538_v10, %s3024_s3 }
 0x86c   :  { %v540_v12 = vpop.permute.xlu1 %539 }
 0x86d   :  { %2534 = vmatmul.mubr.msk.f32.vlgmr.msra.gmra.mxu0 %vm212_vm3, %v540_v12 }
 0x86e   :  { %2548 = vmatpush3.msra.mxu0 %v3115_v2  ;;  %2555 = vmatprep.mubr.msk.f32.mxu0 %vm3022_vm0, %v3021_v0 }
 0x86f   :  { %2549 = vmatprep.subr.mxu0 %v3021_v0 }
 0x870   :  { %2550 = vmatpush3.msra.mxu0 %v3118_v4 }
 0x871   :  { %2551 = vmatprep.subr.mxu0 %v3021_v0 }
 0x872   :  { %2552 = vmatpush3.msra.mxu0 %v3122_v7 }
 0x873   :  { %2553 = vmatprep.subr.mxu0 %v3021_v0 }
 0x874   :  { %2554 = vmatpush3.msra.mxu0 %v3125_v8 }
 0x875   :  { %2569 = vmatprep.subr.mxu0 %v3021_v0 }
 0x92d   :  { %v609_v14 = vpop.f32.mrf.mxu0 }
 0x92e   :  { %v614_v15 = vrot.slane %v609_v14, 2 }
 0x92f   :  { %v2535_v16 = vpop.f32.mrf.mxu0 }
 0x930   :  { %v616_v17 = vadd.f32 %v614_v15, %v3158_v13 }
 0x932   :  { %2727 = vtanh.f32 %v616_v17  ;;  %v2359_v19 = vmul.f32 -1.442695, %v616_v17 }
 0x934   :  { %2729 = vpow2.f32 %v2359_v19 }
 0x93f   :  { %v2728_v18 = vpop.eup %2727 }
 0x940   :  { %629 = vrot.lane.b32.xlu0 %v2728_v18, %s3023_s18 }
 0x941   :  { %v2730_v20 = vpop.eup %2729 }
 0x942   :  { %v620_v21 = vadd.f32 1.0, %v2730_v20 }
 0x944   :  { %2731 = vrcp.f32 %v620_v21 }
 0x951   :  { %v2732_v22 = vpop.eup %2731 }
 0x952   :  { %v627_v26 = vmul.f32 %v2732_v22, %v625_v25 }
 0x9b2   :  { %v630_v23 = vpop.permute.xlu0 %629 }
 0x9b3   :  { %v632_v24 = vmul.f32 %v2732_v22, %v630_v23 }
 0x9b5   :  { %634 = vrot.lane.b32.xlu1 %v632_v24, %s3024_s3 }
 0xa27   :  { %v635_v27 = vpop.permute.xlu1 %634 }
 0xa28   :  { %v637_v28 = vadd.f32 %v635_v27, %v627_v26 }
 0xa2a   :  { %2733 = vtanh.f32 %v637_v28  ;;  %v734_v43 = vrot.slane %v637_v28, 6 }
 0xa37   :  { %v2734_v13 = vpop.eup %2733 }
 0xa38   :  { %640 = vrot.lane.b32.xlu0 %v2734_v13, %s3023_s18 }
 0xaaa   :  { %v641_v29 = vpop.permute.xlu0 %640 }
 0xaab   :  { %v3219_v30 = vmul.f32 %v2732_v22, %v641_v29 }
 0xaad   :  { %v650_v31 = vrot.slane %v3219_v30, 6 }
 0xaaf   :  { %651 = vrot.lane.b32.xlu1 %v650_v31, %s3024_s3 }
 0xb21   :  { %v652_v32 = vpop.permute.xlu1 %651 }
 0xb22   :  { %2545 = vmatmul.mubr.msk.f32.vlgmr.msra.gmra.mxu1 %vm212_vm3, %v652_v32 }
 0xb23   :  { %2559 = vmatpush3.msra.mxu1 %v3115_v2  ;;  %2566 = vmatprep.mubr.msk.f32.mxu1 %vm3022_vm0, %v3021_v0 }
 0xb24   :  { %2560 = vmatprep.subr.mxu1 %v3021_v0 }
 0xb25   :  { %2561 = vmatpush3.msra.mxu1 %v3118_v4 }
 0xb26   :  { %2562 = vmatprep.subr.mxu1 %v3021_v0 }
 0xb27   :  { %2563 = vmatpush3.msra.mxu1 %v3122_v7 }
 0xb28   :  { %2564 = vmatprep.subr.mxu1 %v3021_v0 }
 0xb29   :  { %2565 = vmatpush3.msra.mxu1 %v3125_v8 }
 0xbe2   :  { %v721_v33 = vpop.f32.mrf.mxu1 }
 0xbe3   :  { %v725_v34 = vadd.f32 %v721_v33, %v3156_v11 }
 0xbe4   :  { %v2546_v35 = vpop.f32.mrf.mxu1 }
 0xbe5   :  { %2735 = vtanh.f32 %v725_v34  ;;  %v2361_v37 = vmul.f32 -1.442695, %v725_v34 }
 0xbe7   :  { %2737 = vpow2.f32 %v2361_v37 }
 0xbf2   :  { %v2736_v36 = vpop.eup %2735 }
 0xbf3   :  { %738 = vrot.lane.b32.xlu0 %v2736_v36, %s3023_s18 }
 0xbf4   :  { %v2738_v38 = vpop.eup %2737 }
 0xbf5   :  { %v729_v39 = vadd.f32 1.0, %v2738_v38 }
 0xbf7   :  { %2739 = vrcp.f32 %v729_v39 }
 0xc04   :  { %v2740_v40 = vpop.eup %2739 }
 0xc05   :  { %v736_v44 = vmul.f32 %v2740_v40, %v734_v43 }
 0xc65   :  { %v739_v41 = vpop.permute.xlu0 %738 }
 0xc66   :  { %v741_v42 = vmul.f32 %v2740_v40, %v739_v41 }
 0xc68   :  { %743 = vrot.lane.b32.xlu1 %v741_v42, %s3024_s3 }
 0xcda   :  { %v744_v45 = vpop.permute.xlu1 %743 }
 0xcdb   :  { %v746_v46 = vadd.f32 %v744_v45, %v736_v44 }
 0xcdd   :  { %2741 = vtanh.f32 %v746_v46 }
 0xcea   :  { %v2742_v47 = vpop.eup %2741 }
 0xceb   :  { %749 = vrot.lane.b32.xlu0 %v2742_v47, %s3023_s18 }
 0xd5d   :  { %v750_v49 = vpop.permute.xlu0 %749 }
 0xd5e   :  { %v752_v50 = vmul.f32 %v2740_v40, %v750_v49  ;;  %v1093_v49 = vld [vmem:[#allocation10 + $0x18] sm:$0xff] }
 0xd5f   :  { %2580 = vmatprep.subr.mxu1 %v1093_v49 }
 0xd60   :  { %754 = vrot.lane.b32.xlu1 %v752_v50, %s3024_s3  ;;  %v1092_v50 = vld [vmem:[#allocation10 + $0x10] sm:$0xff] }
 0xdd2   :  { %v755_v51 = vpop.permute.xlu1 %754 }
 0xdd3   :  { %757 = vst.msk [vmem:[#allocation2 + $0x8] sm:$0x3] %vm315_vm2, %v755_v51  ;;  %2556 = vmatmul.mubr.msk.f32.vlgmr.msra.gmra.mxu0 %vm212_vm3, %v755_v51  ;;  %v3283_v51 = vld [vmem:[#allocation12 + $0x18] sm:$0xff] }
 0xdd4   :  { %2570 = vmatpush3.msra.mxu0 %v3115_v2  ;;  %2577 = vmatprep.mubr.msk.f32.mxu0 %vm3022_vm0, %v3021_v0 }
 0xdd5   :  { %2571 = vmatprep.subr.mxu0 %v3021_v0 }
 0xdd6   :  { %2572 = vmatpush3.msra.mxu0 %v3118_v4 }
 0xdd7   :  { %2573 = vmatprep.subr.mxu0 %v3021_v0 }
 0xdd8   :  { %2574 = vmatpush3.msra.mxu0 %v3122_v7 }
 0xdd9   :  { %2575 = vmatprep.subr.mxu0 %v3021_v0 }
 0xdda   :  { %2576 = vmatpush3.msra.mxu0 %v3125_v8  ;;  %v842_v8 = vrot.slane %v746_v46, 6 }
 0xddb   :  { %2591 = vmatprep.subr.mxu0 %v3021_v0 }
 0xe93   :  { %v826_v52 = vpop.f32.mrf.mxu0 }
 0xe94   :  { %v831_v53 = vrot.slane %v826_v52, 6  ;;  %v3286_v52 = vld [vmem:[#allocation12 + $0x10] sm:$0xff] }
 0xe95   :  { %v2557_v2 = vpop.f32.mrf.mxu0 }
 0xe96   :  { %v833_v54 = vadd.f32 %v831_v53, %v3156_v11  ;;  %v1091_v53 = vld [vmem:[#allocation10 + $0x8] sm:$0xff] }
 0xe97   :  { %v3289_v2 = vld [vmem:[#allocation12 + $0x8] sm:$0xff] }
 0xe98   :  { %2743 = vtanh.f32 %v833_v54  ;;  %v2363_v4 = vmul.f32 -1.442695, %v833_v54  ;;  %v3295_v54 = vld [vmem:[#allocation12] sm:$0xff] }
 0xe9a   :  { %2745 = vpow2.f32 %v2363_v4 }
 0xea5   :  { %v2744_v55 = vpop.eup %2743 }
 0xea6   :  { %846 = vrot.lane.b32.xlu0 %v2744_v55, %s3023_s18 }
 0xea7   :  { %v2746_v56 = vpop.eup %2745 }
 0xea8   :  { %v837_v57 = vadd.f32 1.0, %v2746_v56 }
 0xeaa   :  { %2747 = vrcp.f32 %v837_v57 }
 0xeb7   :  { %v2748_v7 = vpop.eup %2747 }
 0xeb8   :  { %v844_v60 = vmul.f32 %v2748_v7, %v842_v8 }
 0xf18   :  { %v847_v58 = vpop.permute.xlu0 %846 }
 0xf19   :  { %v849_v59 = vmul.f32 %v2748_v7, %v847_v58 }
 0xf1b   :  { %851 = vrot.lane.b32.xlu1 %v849_v59, %s3024_s3 }
 0xf8d   :  { %v852_v61 = vpop.permute.xlu1 %851 }
 0xf8e   :  { %v854_v62 = vadd.f32 %v852_v61, %v844_v60  ;;  %v2368_v61 = vld [vmem:[%s3551_s6] ss:$0 sm:$0xff] }
 0xf90   :  { %2749 = vtanh.f32 %v854_v62  ;;  %v953_v23 = vrot.slane %v854_v62, 6 }
 0xf9d   :  { %v2750_v63 = vpop.eup %2749 }
 0xf9e   :  { %857 = vrot.lane.b32.xlu0 %v2750_v63, %s3023_s18 }
0x1010   :  { %v858_v1 = vpop.permute.xlu0 %857 }
0x1011   :  { %v3254_v3 = vmul.f32 %v2748_v7, %v858_v1 }
0x1013   :  { %v866_v5 = vrot.slane %v3254_v3, 2 }
0x1015   :  { %867 = vrot.lane.b32.xlu1 %v866_v5, %s3024_s3 }
0x1087   :  { %v868_v6 = vpop.permute.xlu1 %867 }
0x1088   :  { %2567 = vmatmul.mubr.msk.f32.vlgmr.msra.gmra.mxu1 %vm212_vm3, %v868_v6 }
0x1089   :  { %2581 = vmatpush3.msra.mxu1 %v1093_v49 }
0x108a   :  { %2582 = vmatprep.subr.mxu1 %v1092_v50 }
0x108b   :  { %2583 = vmatpush3.msra.mxu1 %v1092_v50 }
0x108c   :  { %2584 = vmatprep.subr.mxu1 %v1091_v53 }
0x108d   :  { %2585 = vmatpush3.msra.mxu1 %v1091_v53 }
0x1148   :  { %v937_v10 = vpop.f32.mrf.mxu1 }
0x1149   :  { %v942_v12 = vrot.slane %v937_v10, 4 }
0x114a   :  { %v2568_v14 = vpop.f32.mrf.mxu1 }
0x114b   :  { %v944_v15 = vadd.f32 %v942_v12, %v3156_v11 }
0x114d   :  { %2751 = vtanh.f32 %v944_v15  ;;  %v2365_v17 = vmul.f32 -1.442695, %v944_v15 }
0x114f   :  { %2753 = vpow2.f32 %v2365_v17 }
0x115a   :  { %v2752_v16 = vpop.eup %2751 }
0x115b   :  { %957 = vrot.lane.b32.xlu0 %v2752_v16, %s3023_s18 }
0x115c   :  { %v2754_v18 = vpop.eup %2753 }
0x115d   :  { %v948_v19 = vadd.f32 1.0, %v2754_v18 }
0x115f   :  { %2755 = vrcp.f32 %v948_v19 }
0x116c   :  { %v2756_v20 = vpop.eup %2755 }
0x116d   :  { %v955_v24 = vmul.f32 %v2756_v20, %v953_v23 }
0x11cd   :  { %v958_v21 = vpop.permute.xlu0 %957 }
0x11ce   :  { %v960_v22 = vmul.f32 %v2756_v20, %v958_v21 }
0x11d0   :  { %962 = vrot.lane.b32.xlu1 %v960_v22, %s3024_s3 }
0x1242   :  { %v963_v25 = vpop.permute.xlu1 %962 }
0x1243   :  { %v965_v26 = vadd.f32 %v963_v25, %v955_v24 }
0x1245   :  { %2757 = vtanh.f32 %v965_v26 }
0x1252   :  { %v2758_v27 = vpop.eup %2757 }
0x1253   :  { %968 = vrot.lane.b32.xlu0 %v2758_v27, %s3023_s18 }
0x12c5   :  { %v969_v28 = vpop.permute.xlu0 %968 }
0x12c6   :  { %v971_v13 = vmul.f32 %v2756_v20, %v969_v28 }
0x12c8   :  { %v977_v29 = vrot.slane %v971_v13, 4 }
0x12ca   :  { %978 = vrot.lane.b32.xlu1 %v977_v29, %s3024_s3 }
0x133c   :  { %v979_v31 = vpop.permute.xlu1 %978 }
0x133d   :  { %2578 = vmatmul.mubr.msk.f32.vlgmr.msra.gmra.mxu0 %vm212_vm3, %v979_v31 }
0x133e   :  { %2599 = vmatprep.mubr.msk.f32.mxu0 %vm3022_vm0, %v3021_v0  ;;  %2592 = vmatpush3.msra.mxu0 %v3283_v51 }
0x133f   :  { %2593 = vmatprep.subr.mxu0 %v3021_v0 }
0x1340   :  { %2594 = vmatpush3.msra.mxu0 %v3286_v52 }
0x1341   :  { %2595 = vmatprep.subr.mxu0 %v3021_v0 }
0x1342   :  { %2596 = vmatpush3.msra.mxu0 %v3289_v2 }
0x1343   :  { %2597 = vmatprep.subr.mxu0 %v3021_v0 }
0x1344   :  { %2598 = vmatpush3.msra.mxu0 %v3295_v54 }
0x1345   :  { %2600 = vmatmul.mubr.f32.vlgmr.msra.gmra.mxu0 %v3021_v0  ;;  %2613 = vmatprep.subr.mxu0 %v3021_v0 }
0x1346   :  { %2614 = vmatpush3.msra.mxu0 %v3283_v51  ;;  %2621 = vmatprep.mubr.msk.f32.mxu0 %vm3022_vm0, %v3021_v0 }
0x1347   :  { %2615 = vmatprep.subr.mxu0 %v3021_v0 }
0x1348   :  { %2616 = vmatpush3.msra.mxu0 %v3286_v52 }
0x1349   :  { %2617 = vmatprep.subr.mxu0 %v3021_v0 }
0x134a   :  { %2618 = vmatpush3.msra.mxu0 %v3289_v2 }
0x134b   :  { %2619 = vmatprep.subr.mxu0 %v3021_v0 }
0x134c   :  { %2620 = vmatpush3.msra.mxu0 %v3295_v54 }
0x134d   :  { %2635 = vmatprep.subr.mxu0 %v3021_v0 }
0x13fd   :  { %v1048_v32 = vpop.f32.mrf.mxu0 }
0x13fe   :  { %v1053_v33 = vrot.slane %v1048_v32, 2 }
0x13ff   :  { %v2579_v34 = vpop.f32.mrf.mxu0 }
0x1400   :  { %v1055_v35 = vadd.f32 %v1053_v33, %v3156_v11  ;;  %v1064_v11 = vrot.slane %v965_v26, 6 }
0x1402   :  { %2759 = vtanh.f32 %v1055_v35  ;;  %v2367_v37 = vmul.f32 -1.442695, %v1055_v35 }
0x1404   :  { %2761 = vpow2.f32 %v2367_v37 }
0x1405   :  { %v1252_v8 = vpop.f32.mrf.mxu0 }
0x1407   :  { %v2601_v60 = vpop.f32.mrf.mxu0 }
0x140f   :  { %v2760_v36 = vpop.eup %2759 }
0x1410   :  { %1068 = vrot.lane.b32.xlu0 %v2760_v36, %s3023_s18 }
0x1411   :  { %v2762_v38 = vpop.eup %2761 }
0x1412   :  { %v1059_v39 = vadd.f32 1.0, %v2762_v38 }
0x1414   :  { %2763 = vrcp.f32 %v1059_v39 }
0x1421   :  { %v2764_v40 = vpop.eup %2763 }
0x1422   :  { %v1066_v43 = vmul.f32 %v2764_v40, %v1064_v11 }
0x1482   :  { %v1069_v41 = vpop.permute.xlu0 %1068 }
0x1483   :  { %v1071_v42 = vmul.f32 %v2764_v40, %v1069_v41 }
0x1485   :  { %1073 = vrot.lane.b32.xlu1 %v1071_v42, %s3024_s3 }
0x1489   :  { %421 = vrot.lane.b32.xlu1 %v3181_v48, %s3024_s3 }
0x148d   :  { %645 = vrot.lane.b32.xlu1 %v3219_v30, %s3024_s3 }
0x1491   :  { %973 = vrot.lane.b32.xlu1 %v971_v13, %s3024_s3 }
0x14f7   :  { %v1074_v44 = vpop.permute.xlu1 %1073 }
0x14f8   :  { %v1076_v45 = vadd.f32 %v1074_v44, %v1066_v43 }
0x14fa   :  { %2765 = vtanh.f32 %v1076_v45 }
0x14fb   :  { %v422_v46 = vpop.permute.xlu1 %421 }
0x14fc   :  { %425 = vst.msk [vmem:[#allocation2] sm:$0xc] %vm424_vm4, %v422_v46 }
0x14ff   :  { %v646_v47 = vpop.permute.xlu1 %645 }
0x1500   :  { %649 = vst.msk [vmem:[#allocation2] sm:$0xc0] %vm648_vm5, %v646_v47 }
0x1503   :  { %v974_v48 = vpop.permute.xlu1 %973 }
0x1504   :  { %976 = vst.msk [vmem:[#allocation2 + $0x8] sm:$0x30] %vm536_vm6, %v974_v48 }
0x1507   :  { %v2766_v30 = vpop.eup %2765 }
0x1508   :  { %1079 = vrot.lane.b32.xlu0 %v2766_v30, %s3023_s18 }
0x150c   :  { %533 = vrot.lane.b32.xlu0 %v3200_v9, %s3024_s3  ;;  %v1090_v9 = vld [vmem:[#allocation10] sm:$0xff] }
0x150d   :  { %2586 = vmatprep.subr.mxu1 %v1090_v9 }
0x150e   :  { %2587 = vmatpush3.msra.mxu1 %v1090_v9 }
0x150f   :  { %2602 = vmatprep.subr.mxu1 %v3021_v0 }
0x1510   :  { %862 = vrot.lane.b32.xlu0 %v3254_v3, %s3024_s3 }
0x157a   :  { %v1080_v55 = vpop.permute.xlu0 %1079 }
0x157b   :  { %v1082_v4 = vmul.f32 %v2764_v40, %v1080_v55 }
0x157d   :  { %1084 = vrot.lane.b32.xlu0 %v1082_v4, %s3024_s3 }
0x157e   :  { %v534_v56 = vpop.permute.xlu0 %533 }
0x157f   :  { %537 = vst.msk [vmem:[#allocation2] sm:$0x30] %vm536_vm6, %v534_v56 }
0x1582   :  { %v863_v57 = vpop.permute.xlu0 %862 }
0x1583   :  { %865 = vst.msk [vmem:[#allocation2 + $0x8] sm:$0xc] %vm424_vm4, %v863_v57 }
0x1586   :  { %v1088_v7 = vld [vmem:[#allocation2] sm:$0xff] }
0x1587   :  { %2588 = vmatprep.mubr.msk.f32.mxu1 %vm212_vm3, %v1088_v7 }
0x15ef   :  { %v1085_v58 = vpop.permute.xlu0 %1084 }
0x15f0   :  { %1087 = vst.msk [vmem:[#allocation2 + $0x8] sm:$0xc0] %vm648_vm5, %v1085_v58 }
0x15f7   :  { %v1089_v59 = vld [vmem:[#allocation2 + $0x8] sm:$0xff] }
0x15f8   :  { %2589 = vmatmul.mubr.msk.f32.vlgmr.msra.gmra.mxu1 %vm212_vm3, %v1089_v59 }
0x15f9   :  { %2603 = vmatpush3.msra.mxu1 %v3283_v51  ;;  %2610 = vmatprep.mubr.msk.f32.mxu1 %vm3022_vm0, %v3021_v0 }
0x15fa   :  { %2604 = vmatprep.subr.mxu1 %v3021_v0 }
0x15fb   :  { %2605 = vmatpush3.msra.mxu1 %v3286_v52 }
0x15fc   :  { %2606 = vmatprep.subr.mxu1 %v3021_v0 }
0x15fd   :  { %2607 = vmatpush3.msra.mxu1 %v3289_v2 }
0x15fe   :  { %2608 = vmatprep.subr.mxu1 %v3021_v0 }
0x15ff   :  { %2609 = vmatpush3.msra.mxu1 %v3295_v54 }
0x1600   :  { %2624 = vmatprep.subr.mxu1 %v3021_v0 }
0x16b8   :  { %v2590_v62 = vpop.f32.mrf.mxu1 }
0x16b9   :  { %v3330_v63 = vadd.f32 %v2590_v62, %v2368_v61 }
0x16ba   :  { %v1177_v1 = vpop.f32.mrf.mxu1 }
0x16bb   :  { %v3332_v3 = vadd.f32 %v2368_v61, %v1177_v1 }
0x16bd   :  { %v1256_v5 = vadd.f32 %v1252_v8, %v3332_v3 }
0x16bf   :  { %2767 = vtanh.f32 %v1256_v5  ;;  %v2371_v10 = vmul.f32 -1.442695, %v1256_v5 }
0x16c1   :  { %2769 = vpow2.f32 %v2371_v10 }
0x16cc   :  { %v2768_v6 = vpop.eup %2767 }
0x16cd   :  { %1266 = vrot.lane.b32.xlu1 %v2768_v6, %s3023_s18 }
0x16ce   :  { %v2770_v12 = vpop.eup %2769 }
0x16cf   :  { %v1260_v14 = vadd.f32 1.0, %v2770_v12 }
0x16d1   :  { %2771 = vrcp.f32 %v1260_v14 }
0x16de   :  { %v2772_v15 = vpop.eup %2771 }
0x16df   :  { %v1264_v18 = vmul.f32 0.0, %v2772_v15 }
0x173f   :  { %v1267_v16 = vpop.permute.xlu1 %1266 }
0x1740   :  { %v1269_v17 = vmul.f32 %v2772_v15, %v1267_v16 }
0x1742   :  { %1271 = vrot.lane.b32.xlu0 %v1269_v17, %s3024_s3 }
0x17b4   :  { %v1272_v19 = vpop.permute.xlu0 %1271 }
0x17b5   :  { %v1274_v20 = vadd.f32 %v1272_v19, %v1264_v18 }
0x17b7   :  { %2773 = vtanh.f32 %v1274_v20  ;;  %v1370_v36 = vrot.slane %v1274_v20, 6 }
0x17c4   :  { %v2774_v21 = vpop.eup %2773 }
0x17c5   :  { %1277 = vrot.lane.b32.xlu1 %v2774_v21, %s3023_s18 }
0x1837   :  { %v1278_v22 = vpop.permute.xlu1 %1277 }
0x1838   :  { %v1280_v23 = vmul.f32 %v2772_v15, %v1278_v22 }
0x183a   :  { %1282 = vrot.lane.b32.xlu0 %v1280_v23, %s3024_s3 }
0x18ac   :  { %v1283_v24 = vpop.permute.xlu0 %1282 }
0x18ad   :  { %1285 = vst.msk [vmem:[#allocation3] sm:$0x3] %vm315_vm2, %v1283_v24  ;;  %2611 = vmatmul.mubr.msk.f32.vlgmr.msra.gmra.mxu1 %vm212_vm3, %v1283_v24 }
0x18ae   :  { %2625 = vmatpush3.msra.mxu1 %v3283_v51  ;;  %2632 = vmatprep.mubr.msk.f32.mxu1 %vm3022_vm0, %v3021_v0 }
0x18af   :  { %2626 = vmatprep.subr.mxu1 %v3021_v0 }
0x18b0   :  { %2627 = vmatpush3.msra.mxu1 %v3286_v52 }
0x18b1   :  { %2628 = vmatprep.subr.mxu1 %v3021_v0 }
0x18b2   :  { %2629 = vmatpush3.msra.mxu1 %v3289_v2 }
0x18b3   :  { %2630 = vmatprep.subr.mxu1 %v3021_v0 }
0x18b4   :  { %2631 = vmatpush3.msra.mxu1 %v3295_v54 }
0x18b5   :  { %2646 = vmatprep.subr.mxu1 %v3021_v0 }
0x196d   :  { %v1354_v25 = vpop.f32.mrf.mxu1 }
0x196e   :  { %v1359_v26 = vrot.slane %v1354_v25, 6 }
0x196f   :  { %v2612_v27 = vpop.f32.mrf.mxu1 }
0x1970   :  { %v1361_v28 = vadd.f32 %v1359_v26, %v3332_v3 }
0x1972   :  { %2775 = vtanh.f32 %v1361_v28  ;;  %v2373_v29 = vmul.f32 -1.442695, %v1361_v28 }
0x1974   :  { %2777 = vpow2.f32 %v2373_v29 }
0x197f   :  { %v2776_v13 = vpop.eup %2775 }
0x1980   :  { %1374 = vrot.lane.b32.xlu1 %v2776_v13, %s3023_s18 }
0x1981   :  { %v2778_v31 = vpop.eup %2777 }
0x1982   :  { %v1365_v32 = vadd.f32 1.0, %v2778_v31 }
0x1984   :  { %2779 = vrcp.f32 %v1365_v32 }
0x1991   :  { %v2780_v33 = vpop.eup %2779 }
0x1992   :  { %v1372_v37 = vmul.f32 %v2780_v33, %v1370_v36 }
0x19f2   :  { %v1375_v34 = vpop.permute.xlu1 %1374 }
0x19f3   :  { %v1377_v35 = vmul.f32 %v2780_v33, %v1375_v34 }
0x19f5   :  { %1379 = vrot.lane.b32.xlu0 %v1377_v35, %s3024_s3 }
0x1a67   :  { %v1380_v38 = vpop.permute.xlu0 %1379 }
0x1a68   :  { %v1382_v39 = vadd.f32 %v1380_v38, %v1372_v37 }
0x1a6a   :  { %2781 = vtanh.f32 %v1382_v39  ;;  %v1481_v4 = vrot.slane %v1382_v39, 6 }
0x1a77   :  { %v2782_v40 = vpop.eup %2781 }
0x1a78   :  { %1385 = vrot.lane.b32.xlu1 %v2782_v40, %s3023_s18 }
0x1aea   :  { %v1386_v41 = vpop.permute.xlu1 %1385 }
0x1aeb   :  { %v3355_v42 = vmul.f32 %v2780_v33, %v1386_v41 }
0x1aed   :  { %v1394_v11 = vrot.slane %v3355_v42, 2 }
0x1aef   :  { %1395 = vrot.lane.b32.xlu0 %v1394_v11, %s3024_s3 }
0x1b61   :  { %v1396_v43 = vpop.permute.xlu0 %1395 }
0x1b62   :  { %2622 = vmatmul.mubr.msk.f32.vlgmr.msra.gmra.mxu0 %vm212_vm3, %v1396_v43 }
0x1b63   :  { %2636 = vmatpush3.msra.mxu0 %v3283_v51  ;;  %2643 = vmatprep.mubr.msk.f32.mxu0 %vm3022_vm0, %v3021_v0 }
0x1b64   :  { %2637 = vmatprep.subr.mxu0 %v3021_v0 }
0x1b65   :  { %2638 = vmatpush3.msra.mxu0 %v3286_v52 }
0x1b66   :  { %2639 = vmatprep.subr.mxu0 %v3021_v0 }
0x1b67   :  { %2640 = vmatpush3.msra.mxu0 %v3289_v2 }
0x1b68   :  { %2641 = vmatprep.subr.mxu0 %v3021_v0 }
0x1b69   :  { %2642 = vmatpush3.msra.mxu0 %v3295_v54 }
0x1b6a   :  { %2657 = vmatprep.subr.mxu0 %v3021_v0 }
0x1c22   :  { %v1465_v44 = vpop.f32.mrf.mxu0 }
0x1c23   :  { %v1470_v45 = vrot.slane %v1465_v44, 4 }
0x1c24   :  { %v2623_v46 = vpop.f32.mrf.mxu0 }
0x1c25   :  { %v1472_v47 = vadd.f32 %v1470_v45, %v3332_v3 }
0x1c27   :  { %2783 = vtanh.f32 %v1472_v47  ;;  %v2375_v30 = vmul.f32 -1.442695, %v1472_v47 }
0x1c29   :  { %2785 = vpow2.f32 %v2375_v30 }
0x1c34   :  { %v2784_v48 = vpop.eup %2783 }
0x1c35   :  { %1485 = vrot.lane.b32.xlu1 %v2784_v48, %s3023_s18 }
0x1c36   :  { %v2786_v49 = vpop.eup %2785 }
0x1c37   :  { %v1476_v50 = vadd.f32 1.0, %v2786_v49 }
0x1c39   :  { %2787 = vrcp.f32 %v1476_v50 }
0x1c46   :  { %v2788_v53 = vpop.eup %2787 }
0x1c47   :  { %v1483_v56 = vmul.f32 %v2788_v53, %v1481_v4 }
0x1ca7   :  { %v1486_v9 = vpop.permute.xlu1 %1485 }
0x1ca8   :  { %v1488_v55 = vmul.f32 %v2788_v53, %v1486_v9 }
0x1caa   :  { %1490 = vrot.lane.b32.xlu0 %v1488_v55, %s3024_s3 }
0x1d1c   :  { %v1491_v57 = vpop.permute.xlu0 %1490 }
0x1d1d   :  { %v1493_v7 = vadd.f32 %v1491_v57, %v1483_v56 }
0x1d1f   :  { %2789 = vtanh.f32 %v1493_v7  ;;  %v1592_v19 = vrot.slane %v1493_v7, 6 }
0x1d2c   :  { %v2790_v58 = vpop.eup %2789 }
0x1d2d   :  { %1496 = vrot.lane.b32.xlu1 %v2790_v58, %s3023_s18 }
0x1d9f   :  { %v1497_v59 = vpop.permute.xlu1 %1496 }
0x1da0   :  { %v3374_v8 = vmul.f32 %v2788_v53, %v1497_v59 }
0x1da2   :  { %v1505_v60 = vrot.slane %v3374_v8, 4 }
0x1da4   :  { %1506 = vrot.lane.b32.xlu0 %v1505_v60, %s3024_s3 }
0x1e16   :  { %v1507_v61 = vpop.permute.xlu0 %1506 }
0x1e17   :  { %2633 = vmatmul.mubr.msk.f32.vlgmr.msra.gmra.mxu1 %vm212_vm3, %v1507_v61 }
0x1e18   :  { %2647 = vmatpush3.msra.mxu1 %v3283_v51  ;;  %2654 = vmatprep.mubr.msk.f32.mxu1 %vm3022_vm0, %v3021_v0 }
0x1e19   :  { %2648 = vmatprep.subr.mxu1 %v3021_v0 }
0x1e1a   :  { %2649 = vmatpush3.msra.mxu1 %v3286_v52 }
0x1e1b   :  { %2650 = vmatprep.subr.mxu1 %v3021_v0 }
0x1e1c   :  { %2651 = vmatpush3.msra.mxu1 %v3289_v2 }
0x1e1d   :  { %2652 = vmatprep.subr.mxu1 %v3021_v0 }
0x1e1e   :  { %2653 = vmatpush3.msra.mxu1 %v3295_v54 }
0x1e1f   :  { %2668 = vmatprep.subr.mxu1 %v3021_v0 }
0x1ed7   :  { %v1576_v62 = vpop.f32.mrf.mxu1 }
0x1ed8   :  { %v1581_v1 = vrot.slane %v1576_v62, 2 }
0x1ed9   :  { %v2634_v5 = vpop.f32.mrf.mxu1 }
0x1eda   :  { %v1583_v6 = vadd.f32 %v1581_v1, %v3332_v3 }
0x1edc   :  { %2791 = vtanh.f32 %v1583_v6  ;;  %v2377_v12 = vmul.f32 -1.442695, %v1583_v6 }
0x1ede   :  { %2793 = vpow2.f32 %v2377_v12 }
0x1ee9   :  { %v2792_v10 = vpop.eup %2791 }
0x1eea   :  { %1596 = vrot.lane.b32.xlu1 %v2792_v10, %s3023_s18 }
0x1eeb   :  { %v2794_v14 = vpop.eup %2793 }
0x1eec   :  { %v1587_v15 = vadd.f32 1.0, %v2794_v14 }
0x1eee   :  { %2795 = vrcp.f32 %v1587_v15 }
0x1efb   :  { %v2796_v16 = vpop.eup %2795 }
0x1efc   :  { %v1594_v20 = vmul.f32 %v2796_v16, %v1592_v19 }
0x1f5c   :  { %v1597_v17 = vpop.permute.xlu1 %1596 }
0x1f5d   :  { %v1599_v18 = vmul.f32 %v2796_v16, %v1597_v17 }
0x1f5f   :  { %1601 = vrot.lane.b32.xlu0 %v1599_v18, %s3024_s3 }
0x1fd1   :  { %v1602_v21 = vpop.permute.xlu0 %1601 }
0x1fd2   :  { %v1604_v22 = vadd.f32 %v1602_v21, %v1594_v20 }
0x1fd4   :  { %2797 = vtanh.f32 %v1604_v22  ;;  %v1700_v37 = vrot.slane %v1604_v22, 6 }
0x1fe1   :  { %v2798_v3 = vpop.eup %2797 }
0x1fe2   :  { %1607 = vrot.lane.b32.xlu1 %v2798_v3, %s3023_s18 }
0x2054   :  { %v1608_v23 = vpop.permute.xlu1 %1607 }
0x2055   :  { %v3393_v24 = vmul.f32 %v2796_v16, %v1608_v23 }
0x2057   :  { %v1616_v25 = vrot.slane %v3393_v24, 6 }
0x2059   :  { %1617 = vrot.lane.b32.xlu0 %v1616_v25, %s3024_s3 }
0x20cb   :  { %v1618_v26 = vpop.permute.xlu0 %1617 }
0x20cc   :  { %2644 = vmatmul.mubr.msk.f32.vlgmr.msra.gmra.mxu0 %vm212_vm3, %v1618_v26 }
0x20cd   :  { %2658 = vmatpush3.msra.mxu0 %v3283_v51  ;;  %2665 = vmatprep.mubr.msk.f32.mxu0 %vm3022_vm0, %v3021_v0 }
0x20ce   :  { %2659 = vmatprep.subr.mxu0 %v3021_v0 }
0x20cf   :  { %2660 = vmatpush3.msra.mxu0 %v3286_v52 }
0x20d0   :  { %2661 = vmatprep.subr.mxu0 %v3021_v0 }
0x20d1   :  { %2662 = vmatpush3.msra.mxu0 %v3289_v2 }
0x20d2   :  { %2663 = vmatprep.subr.mxu0 %v3021_v0 }
0x20d3   :  { %2664 = vmatpush3.msra.mxu0 %v3295_v54 }
0x218c   :  { %v1687_v27 = vpop.f32.mrf.mxu0 }
0x218d   :  { %v1691_v28 = vadd.f32 %v1687_v27, %v3330_v63 }
0x218e   :  { %v2645_v13 = vpop.f32.mrf.mxu0 }
0x218f   :  { %2799 = vtanh.f32 %v1691_v28  ;;  %v2379_v31 = vmul.f32 -1.442695, %v1691_v28 }
0x2191   :  { %2801 = vpow2.f32 %v2379_v31 }
0x219c   :  { %v2800_v29 = vpop.eup %2799 }
0x219d   :  { %1704 = vrot.lane.b32.xlu1 %v2800_v29, %s3023_s18 }
0x219e   :  { %v2802_v32 = vpop.eup %2801 }
0x219f   :  { %v1695_v33 = vadd.f32 1.0, %v2802_v32 }
0x21a1   :  { %2803 = vrcp.f32 %v1695_v33 }
0x21ae   :  { %v2804_v34 = vpop.eup %2803 }
0x21af   :  { %v1702_v38 = vmul.f32 %v2804_v34, %v1700_v37 }
0x220f   :  { %v1705_v35 = vpop.permute.xlu1 %1704 }
0x2210   :  { %v1707_v36 = vmul.f32 %v2804_v34, %v1705_v35 }
0x2212   :  { %1709 = vrot.lane.b32.xlu0 %v1707_v36, %s3024_s3 }
0x2284   :  { %v1710_v39 = vpop.permute.xlu0 %1709 }
0x2285   :  { %v1712_v40 = vadd.f32 %v1710_v39, %v1702_v38 }
0x2287   :  { %2805 = vtanh.f32 %v1712_v40 }
0x2294   :  { %v2806_v41 = vpop.eup %2805 }
0x2295   :  { %1715 = vrot.lane.b32.xlu1 %v2806_v41, %s3023_s18 }
0x2307   :  { %v1716_v11 = vpop.permute.xlu1 %1715 }
0x2308   :  { %v1718_v43 = vmul.f32 %v2804_v34, %v1716_v11  ;;  %v2058_v11 = vld [vmem:[#allocation13 + $0x10] sm:$0xff] }
0x230a   :  { %1720 = vrot.lane.b32.xlu0 %v1718_v43, %s3024_s3  ;;  %v2057_v43 = vld [vmem:[#allocation13 + $0x8] sm:$0xff] }
0x237c   :  { %v1721_v44 = vpop.permute.xlu0 %1720 }
0x237d   :  { %1723 = vst.msk [vmem:[#allocation3 + $0x8] sm:$0x3] %vm315_vm2, %v1721_v44  ;;  %2655 = vmatmul.mubr.msk.f32.vlgmr.msra.gmra.mxu1 %vm212_vm3, %v1721_v44  ;;  %v2056_v44 = vld [vmem:[#allocation13] sm:$0xff] }
0x237e   :  { %2669 = vmatpush3.msra.mxu1 %v3283_v51  ;;  %2676 = vmatprep.mubr.msk.f32.mxu1 %vm3022_vm0, %v3021_v0 }
0x237f   :  { %2670 = vmatprep.subr.mxu1 %v3021_v0 }
0x2380   :  { %2671 = vmatpush3.msra.mxu1 %v3286_v52 }
0x2381   :  { %2672 = vmatprep.subr.mxu1 %v3021_v0 }
0x2382   :  { %2673 = vmatpush3.msra.mxu1 %v3289_v2 }
0x2383   :  { %2674 = vmatprep.subr.mxu1 %v3021_v0  ;;  %v1808_v0 = vrot.slane %v1712_v40, 6 }
0x2384   :  { %2675 = vmatpush3.msra.mxu1 %v3295_v54 }
0x243d   :  { %v1792_v45 = vpop.f32.mrf.mxu1 }
0x243e   :  { %v1797_v46 = vrot.slane %v1792_v45, 6 }
0x243f   :  { %v2656_v47 = vpop.f32.mrf.mxu1 }
0x2440   :  { %v1799_v51 = vadd.f32 %v1797_v46, %v3330_v63 }
0x2442   :  { %2807 = vtanh.f32 %v1799_v51  ;;  %v2381_v30 = vmul.f32 -1.442695, %v1799_v51 }
0x2444   :  { %2809 = vpow2.f32 %v2381_v30 }
0x244f   :  { %v2808_v48 = vpop.eup %2807 }
0x2450   :  { %1812 = vrot.lane.b32.xlu1 %v2808_v48, %s3023_s18 }
0x2451   :  { %v2810_v52 = vpop.eup %2809 }
0x2452   :  { %v1803_v49 = vadd.f32 1.0, %v2810_v52  ;;  %v2386_v52 = vld [vmem:[%s3553_s8] ss:$0 sm:$0xff]  ;;  %s3025_s8 = smov [#allocation15]  }
0x2453   :  { %s2335_s22 = sshll.u32 %s3025_s8, 4  ;;  %s2336_s22 = int_to_ptr.vmem [resolvable:$true] %s2335_s22 }
0x2454   :  { %2811 = vrcp.f32 %v1803_v49  ;;  %s2983_s23 = scalar_lea.vmem %s2336_s22, 256  ;;  %p2988_p3 = scmp.lt.s32.totalorder %s2336_s22, %s2336_s22 }
0x2455   :  { %p2984_p2 = scmp.ne.s32.totalorder %s2336_s22, %s2983_s23  ;;  %p2989_p4 = scmp.lt.s32.totalorder %s2983_s23, %s2983_s23 }
0x2457   :  { %p2990_p5 = por %p2989_p4, %p2988_p3 }
0x2459   :  { %p2991_p6 = pnand %p2990_p5, %p2984_p2 }
0x2461   :  { %v2812_v50 = vpop.eup %2811 }
0x2462   :  { %v1810_v54 = vmul.f32 %v2812_v50, %v1808_v0 }
0x24c2   :  { %v1813_v2 = vpop.permute.xlu1 %1812 }
0x24c3   :  { %v1815_v53 = vmul.f32 %v2812_v50, %v1813_v2 }
0x24c5   :  { %1817 = vrot.lane.b32.xlu0 %v1815_v53, %s3024_s3 }
0x2537   :  { %v1818_v9 = vpop.permute.xlu0 %1817 }
0x2538   :  { %v1820_v55 = vadd.f32 %v1818_v9, %v1810_v54 }
0x253a   :  { %2813 = vtanh.f32 %v1820_v55  ;;  %v1919_v16 = vrot.slane %v1820_v55, 6 }
0x2547   :  { %v2814_v4 = vpop.eup %2813 }
0x2548   :  { %1823 = vrot.lane.b32.xlu1 %v2814_v4, %s3023_s18 }
0x25ba   :  { %v1824_v56 = vpop.permute.xlu1 %1823 }
0x25bb   :  { %v3427_v57 = vmul.f32 %v2812_v50, %v1824_v56 }
0x25bd   :  { %v1832_v7 = vrot.slane %v3427_v57, 2 }
0x25bf   :  { %1833 = vrot.lane.b32.xlu0 %v1832_v7, %s3024_s3 }
0x2631   :  { %v1834_v58 = vpop.permute.xlu0 %1833 }
0x2632   :  { %2666 = vmatmul.mubr.msk.f32.vlgmr.msra.gmra.mxu0 %vm212_vm3, %v1834_v58 }
0x26f2   :  { %v1903_v59 = vpop.f32.mrf.mxu0 }
0x26f3   :  { %v1908_v60 = vrot.slane %v1903_v59, 4 }
0x26f4   :  { %v2667_v61 = vpop.f32.mrf.mxu0 }
0x26f5   :  { %v1910_v62 = vadd.f32 %v1908_v60, %v3330_v63 }
0x26f7   :  { %2815 = vtanh.f32 %v1910_v62  ;;  %v2383_v5 = vmul.f32 -1.442695, %v1910_v62 }
0x26f9   :  { %2817 = vpow2.f32 %v2383_v5 }
0x2704   :  { %v2816_v1 = vpop.eup %2815 }
0x2705   :  { %1923 = vrot.lane.b32.xlu1 %v2816_v1, %s3023_s18 }
0x2706   :  { %v2818_v6 = vpop.eup %2817 }
0x2707   :  { %v1914_v10 = vadd.f32 1.0, %v2818_v6 }
0x2709   :  { %2819 = vrcp.f32 %v1914_v10 }
0x2716   :  { %v2820_v12 = vpop.eup %2819 }
0x2717   :  { %v1921_v17 = vmul.f32 %v2820_v12, %v1919_v16 }
0x2777   :  { %v1924_v14 = vpop.permute.xlu1 %1923 }
0x2778   :  { %v1926_v15 = vmul.f32 %v2820_v12, %v1924_v14 }
0x277a   :  { %1928 = vrot.lane.b32.xlu0 %v1926_v15, %s3024_s3 }
0x27ec   :  { %v1929_v18 = vpop.permute.xlu0 %1928 }
0x27ed   :  { %v1931_v19 = vadd.f32 %v1929_v18, %v1921_v17 }
0x27ef   :  { %2821 = vtanh.f32 %v1931_v19 }
0x27fc   :  { %v2822_v20 = vpop.eup %2821 }
0x27fd   :  { %1934 = vrot.lane.b32.xlu1 %v2822_v20, %s3023_s18 }
0x286f   :  { %v1935_v21 = vpop.permute.xlu1 %1934 }
0x2870   :  { %v1937_v22 = vmul.f32 %v2820_v12, %v1935_v21 }
0x2872   :  { %v1943_v3 = vrot.slane %v1937_v22, 4 }
0x2874   :  { %1944 = vrot.lane.b32.xlu0 %v1943_v3, %s3024_s3 }
0x28e6   :  { %v1945_v23 = vpop.permute.xlu0 %1944 }
0x28e7   :  { %2677 = vmatmul.mubr.msk.f32.vlgmr.msra.gmra.mxu1 %vm212_vm3, %v1945_v23 }
0x29a7   :  { %v2014_v25 = vpop.f32.mrf.mxu1 }
0x29a8   :  { %v2019_v26 = vrot.slane %v2014_v25, 2 }
0x29a9   :  { %v2678_v27 = vpop.f32.mrf.mxu1 }
0x29aa   :  { %v2021_v28 = vadd.f32 %v2019_v26, %v3330_v63  ;;  %v2030_v63 = vrot.slane %v1931_v19, 6 }
0x29ac   :  { %2823 = vtanh.f32 %v2021_v28  ;;  %v2385_v29 = vmul.f32 -1.442695, %v2021_v28 }
0x29ae   :  { %2825 = vpow2.f32 %v2385_v29 }
0x29b9   :  { %v2824_v13 = vpop.eup %2823 }
0x29ba   :  { %2034 = vrot.lane.b32.xlu1 %v2824_v13, %s3023_s18 }
0x29bb   :  { %v2826_v31 = vpop.eup %2825 }
0x29bc   :  { %v2025_v32 = vadd.f32 1.0, %v2826_v31 }
0x29be   :  { %2827 = vrcp.f32 %v2025_v32 }
0x29cb   :  { %v2828_v33 = vpop.eup %2827 }
0x29cc   :  { %v2032_v36 = vmul.f32 %v2828_v33, %v2030_v63 }
0x2a2c   :  { %v2035_v34 = vpop.permute.xlu1 %2034 }
0x2a2d   :  { %v2037_v35 = vmul.f32 %v2828_v33, %v2035_v34 }
0x2a2f   :  { %2039 = vrot.lane.b32.xlu0 %v2037_v35, %s3024_s3 }
0x2a33   :  { %1390 = vrot.lane.b32.xlu0 %v3355_v42, %s3024_s3 }
0x2a37   :  { %1612 = vrot.lane.b32.xlu0 %v3393_v24, %s3024_s3  ;;  %v2059_v24 = vld [vmem:[#allocation13 + $0x18] sm:$0xff] }
0x2a38   :  { %2679 = vmatprep.subr.mxu0 %v2059_v24 }
0x2a39   :  { %2680 = vmatpush3.msra.mxu0 %v2059_v24 }
0x2a3a   :  { %2681 = vmatprep.subr.mxu0 %v2058_v11 }
0x2a3b   :  { %1939 = vrot.lane.b32.xlu0 %v1937_v22, %s3024_s3  ;;  %2682 = vmatpush3.msra.mxu0 %v2058_v11 }
0x2a3c   :  { %2683 = vmatprep.subr.mxu0 %v2057_v43 }
0x2a3d   :  { %2684 = vmatpush3.msra.mxu0 %v2057_v43 }
0x2a3e   :  { %2685 = vmatprep.subr.mxu0 %v2056_v44 }
0x2a3f   :  { %2686 = vmatpush3.msra.mxu0 %v2056_v44 }
0x2aa1   :  { %v2040_v37 = vpop.permute.xlu0 %2039 }
0x2aa2   :  { %v2042_v38 = vadd.f32 %v2040_v37, %v2032_v36 }
0x2aa4   :  { %2829 = vtanh.f32 %v2042_v38 }
0x2aa5   :  { %v1391_v39 = vpop.permute.xlu0 %1390 }
0x2aa6   :  { %1393 = vst.msk [vmem:[#allocation3] sm:$0xc] %vm424_vm4, %v1391_v39 }
0x2aa9   :  { %v1613_v40 = vpop.permute.xlu0 %1612 }
0x2aaa   :  { %1615 = vst.msk [vmem:[#allocation3] sm:$0xc0] %vm648_vm5, %v1613_v40 }
0x2aad   :  { %v1940_v41 = vpop.permute.xlu0 %1939 }
0x2aae   :  { %1942 = vst.msk [vmem:[#allocation3 + $0x8] sm:$0x30] %vm536_vm6, %v1940_v41 }
0x2ab1   :  { %v2830_v42 = vpop.eup %2829 }
0x2ab2   :  { %2045 = vrot.lane.b32.xlu1 %v2830_v42, %s3023_s18 }
0x2ab6   :  { %1501 = vrot.lane.b32.xlu1 %v3374_v8, %s3024_s3 }
0x2aba   :  { %1828 = vrot.lane.b32.xlu1 %v3427_v57, %s3024_s3 }
0x2b24   :  { %v2046_v45 = vpop.permute.xlu1 %2045 }
0x2b25   :  { %v2048_v46 = vmul.f32 %v2828_v33, %v2046_v45 }
0x2b27   :  { %2050 = vrot.lane.b32.xlu1 %v2048_v46, %s3024_s3 }
0x2b28   :  { %v1502_v8 = vpop.permute.xlu1 %1501 }
0x2b29   :  { %1504 = vst.msk [vmem:[#allocation3] sm:$0x30] %vm536_vm6, %v1502_v8 }
0x2b2c   :  { %v1829_v47 = vpop.permute.xlu1 %1828 }
0x2b2d   :  { %1831 = vst.msk [vmem:[#allocation3 + $0x8] sm:$0xc] %vm424_vm4, %v1829_v47 }
0x2b30   :  { %v2054_v51 = vld [vmem:[#allocation3] sm:$0xff] }
0x2b31   :  { %2687 = vmatprep.mubr.msk.f32.mxu0 %vm212_vm3, %v2054_v51 }
0x2b99   :  { %v2051_v48 = vpop.permute.xlu1 %2050 }
0x2b9a   :  { %2053 = vst.msk [vmem:[#allocation3 + $0x8] sm:$0xc0] %vm648_vm5, %v2051_v48 }
0x2ba1   :  { %v2055_v30 = vld [vmem:[#allocation3 + $0x8] sm:$0xff] }
0x2ba2   :  { %2688 = vmatmul.mubr.msk.f32.vlgmr.msra.gmra.mxu0 %vm212_vm3, %v2055_v30 }
0x2c62   :  { %v2689_v49 = vpop.f32.mrf.mxu0 }
0x2c63   :  { %v3463_v50 = vadd.f32 %v2689_v49, %v2386_v52 }
0x2c64   :  { %v2139_v2 = vpop.f32.mrf.mxu0 }
0x2c65   :  { %v2241_v53 = vsel %vm2148_vm7, %v3463_v50, -inf  ;;  %v3467_v0 = vadd.f32 %v2386_v52, %v2139_v2  ;;  %v2261_v54 = vsel %vm2169_vm8, %v3463_v50, -inf  ;;  %v2284_v9 = vsel %vm2193_vm9, %v3463_v50, -inf }
0x2c66   :  { %v2242_v55 = vrot.slane %v2241_v53, 4  ;;  %v2262_v4 = vrot.slane %v2261_v54, 4  ;;  %v2285_v56 = vrot.slane %v2284_v9, 4  ;;  %v2307_v57 = vsel %vm2217_vm10, %v3463_v50, -inf }
0x2c67   :  { %v2149_v7 = vsel %vm2148_vm7, %v3467_v0, -inf  ;;  %v2170_v58 = vsel %vm2169_vm8, %v3467_v0, -inf  ;;  %v2194_v59 = vsel %vm2193_vm9, %v3467_v0, -inf  ;;  %v2218_v60 = vsel %vm2217_vm10, %v3467_v0, -inf }
0x2c68   :  { %v2243_v61 = vmax.f32 %v2241_v53, %v2242_v55  ;;  %v2150_v62 = vrot.slane %v2149_v7, 4  ;;  %v2171_v1 = vrot.slane %v2170_v58, 4  ;;  %v2195_v5 = vrot.slane %v2194_v59, 4 }
0x2c69   :  { %v2219_v6 = vrot.slane %v2218_v60, 4  ;;  %v2263_v10 = vmax.f32 %v2261_v54, %v2262_v4  ;;  %v2286_v12 = vmax.f32 %v2284_v9, %v2285_v56  ;;  %v2308_v14 = vrot.slane %v2307_v57, 4 }
0x2c6a   :  { %v2244_v15 = vrot.slane %v2243_v61, 2  ;;  %v2151_v16 = vmax.f32 %v2149_v7, %v2150_v62  ;;  %v2172_v17 = vmax.f32 %v2170_v58, %v2171_v1  ;;  %v2196_v18 = vmax.f32 %v2194_v59, %v2195_v5 }
0x2c6b   :  { %v2220_v19 = vmax.f32 %v2218_v60, %v2219_v6  ;;  %v2264_v20 = vrot.slane %v2263_v10, 2  ;;  %v2287_v21 = vrot.slane %v2286_v12, 2  ;;  %v2309_v22 = vmax.f32 %v2307_v57, %v2308_v14 }
0x2c6c   :  { %v2245_v3 = vmax.f32 %v2243_v61, %v2244_v15  ;;  %v2152_v23 = vrot.slane %v2151_v16, 2  ;;  %v2173_v25 = vrot.slane %v2172_v17, 2  ;;  %v2197_v26 = vrot.slane %v2196_v18, 2 }
0x2c6d   :  { %v2221_v27 = vrot.slane %v2220_v19, 2  ;;  %v2265_v28 = vmax.f32 %v2263_v10, %v2264_v20  ;;  %v2288_v13 = vmax.f32 %v2286_v12, %v2287_v21  ;;  %v2310_v29 = vrot.slane %v2309_v22, 2 }
0x2c6e   :  { %v2246_v31 = vrot.slane %v2245_v3, 1  ;;  %v2153_v32 = vmax.f32 %v2151_v16, %v2152_v23  ;;  %v2174_v33 = vmax.f32 %v2172_v17, %v2173_v25  ;;  %v2198_v34 = vmax.f32 %v2196_v18, %v2197_v26 }
0x2c6f   :  { %v2222_v35 = vmax.f32 %v2220_v19, %v2221_v27  ;;  %v2266_v63 = vrot.slane %v2265_v28, 1  ;;  %v2289_v36 = vrot.slane %v2288_v13, 1  ;;  %v2311_v37 = vmax.f32 %v2309_v22, %v2310_v29 }
0x2c70   :  { %v2247_v38 = vmax.f32 %v2245_v3, %v2246_v31  ;;  %v2154_v39 = vrot.slane %v2153_v32, 1  ;;  %v2175_v40 = vrot.slane %v2174_v33, 1  ;;  %v2199_v41 = vrot.slane %v2198_v34, 1 }
0x2c71   :  { %v2223_v42 = vrot.slane %v2222_v35, 1  ;;  %v2267_v24 = vmax.f32 %v2265_v28, %v2266_v63  ;;  %v2290_v11 = vmax.f32 %v2288_v13, %v2289_v36  ;;  %v2312_v43 = vrot.slane %v2311_v37, 1 }
0x2c72   :  { %v2248_v44 = vsub.f32 %v3463_v50, %v2247_v38  ;;  %v2155_v45 = vmax.f32 %v2153_v32, %v2154_v39  ;;  %v2176_v46 = vmax.f32 %v2174_v33, %v2175_v40  ;;  %v2200_v8 = vmax.f32 %v2198_v34, %v2199_v41 }
0x2c73   :  { %v2224_v47 = vmax.f32 %v2222_v35, %v2223_v42  ;;  %v2268_v51 = vsub.f32 %v3463_v50, %v2267_v24  ;;  %v2291_v48 = vsub.f32 %v3463_v50, %v2290_v11  ;;  %v2313_v30 = vmax.f32 %v2311_v37, %v2312_v43 }
0x2c74   :  { %v2249_v52 = vmul.f32 1.442695, %v2248_v44  ;;  %v2156_v49 = vsub.f32 %v3467_v0, %v2155_v45  ;;  %v2177_v2 = vsub.f32 %v3467_v0, %v2176_v46  ;;  %v2201_v53 = vsub.f32 %v3467_v0, %v2200_v8 }
0x2c75   :  { %v2225_v54 = vsub.f32 %v3467_v0, %v2224_v47  ;;  %v2269_v9 = vmul.f32 1.442695, %v2268_v51  ;;  %v2314_v55 = vsub.f32 %v3463_v50, %v2313_v30  ;;  %v2292_v58 = vmul.f32 1.442695, %v2291_v48 }
0x2c76   :  { %2831 = vpow2.f32 %v2249_v52  ;;  %v2157_v4 = vmul.f32 1.442695, %v2156_v49  ;;  %v2178_v56 = vmul.f32 1.442695, %v2177_v2  ;;  %v2202_v57 = vmul.f32 1.442695, %v2201_v53 }
0x2c77   :  { %v2226_v7 = vmul.f32 1.442695, %v2225_v54  ;;  %2833 = vpow2.f32 %v2269_v9  ;;  %v2315_v59 = vmul.f32 1.442695, %v2314_v55 }
0x2c78   :  { %2835 = vpow2.f32 %v2157_v4 }
0x2c79   :  { %2837 = vpow2.f32 %v2178_v56 }
0x2c7a   :  { %2839 = vpow2.f32 %v2202_v57 }
0x2c7b   :  { %2841 = vpow2.f32 %v2226_v7 }
0x2c7c   :  { %2843 = vpow2.f32 %v2292_v58 }
0x2c7d   :  { %2845 = vpow2.f32 %v2315_v59 }
0x2c83   :  { %v3491_v60 = vpop.eup %2831 }
0x2c84   :  { %v3493_v0 = vpop.eup %2833  ;;  %v2251_v50 = vsel %vm2148_vm7, %v3491_v60, 0.0 }
0x2c85   :  { %v3497_v61 = vpop.eup %2835  ;;  %v2252_v62 = vrot.slane %v2251_v50, 4  ;;  %v2272_v1 = vrot.slane %v3493_v0, 2 }
0x2c86   :  { %v3500_v5 = vpop.eup %2837  ;;  %v2159_v6 = vsel %vm2148_vm7, %v3497_v61, 0.0 }
0x2c87   :  { %v3504_v10 = vpop.eup %2839  ;;  %v2160_v12 = vrot.slane %v2159_v6, 4  ;;  %v2181_v14 = vrot.slane %v3500_v5, 2  ;;  %v2253_v15 = vadd.f32 %v2252_v62, %v2251_v50  ;;  %v2274_v16 = vsel %vm2148_vm7, %v2272_v1, 0.0 }
0x2c88   :  { %v3508_v17 = vpop.eup %2841  ;;  %v2205_v18 = vrot.slane %v3504_v10, 4  ;;  %v2275_v19 = vrot.slane %v2274_v16, 4 }
0x2c89   :  { %v3511_v20 = vpop.eup %2843  ;;  %v2161_v21 = vadd.f32 %v2160_v12, %v2159_v6  ;;  %v2183_v22 = vsel %vm2148_vm7, %v2181_v14, 0.0  ;;  %v2229_v3 = vrot.slane %v3508_v17, 6  ;;  %v2254_v23 = vrot.slane %v2253_v15, 2 }
0x2c8a   :  { %v2184_v25 = vrot.slane %v2183_v22, 4  ;;  %v2207_v26 = vsel %vm2148_vm7, %v2205_v18, 0.0  ;;  %v2276_v27 = vadd.f32 %v2275_v19, %v2274_v16  ;;  %v2295_v28 = vrot.slane %v3511_v20, 4  ;;  %v3517_v13 = vpop.eup %2845 }
0x2c8b   :  { %v2162_v29 = vrot.slane %v2161_v21, 2  ;;  %v2208_v31 = vrot.slane %v2207_v26, 4  ;;  %v2231_v32 = vsel %vm2148_vm7, %v2229_v3, 0.0  ;;  %v2255_v33 = vadd.f32 %v2254_v23, %v2253_v15 }
0x2c8c   :  { %v2185_v34 = vadd.f32 %v2184_v25, %v2183_v22  ;;  %v2232_v35 = vrot.slane %v2231_v32, 4  ;;  %v2277_v63 = vrot.slane %v2276_v27, 2  ;;  %v2297_v36 = vsel %vm2148_vm7, %v2295_v28, 0.0 }
0x2c8d   :  { %v2163_v37 = vadd.f32 %v2162_v29, %v2161_v21  ;;  %v2209_v38 = vadd.f32 %v2208_v31, %v2207_v26  ;;  %v2256_v39 = vrot.slane %v2255_v33, 1  ;;  %v2298_v40 = vrot.slane %v2297_v36, 4 }
0x2c8e   :  { %v2186_v41 = vrot.slane %v2185_v34, 2  ;;  %v2233_v42 = vadd.f32 %v2232_v35, %v2231_v32  ;;  %v2278_v24 = vadd.f32 %v2277_v63, %v2276_v27  ;;  %v2318_v11 = vrot.slane %v3517_v13, 6 }
0x2c8f   :  { %v2164_v43 = vrot.slane %v2163_v37, 1  ;;  %v2210_v44 = vrot.slane %v2209_v38, 2  ;;  %v2257_v45 = vadd.f32 %v2256_v39, %v2255_v33  ;;  %v2299_v46 = vadd.f32 %v2298_v40, %v2297_v36 }
0x2c90   :  { %v2187_v8 = vadd.f32 %v2186_v41, %v2185_v34  ;;  %v2234_v47 = vrot.slane %v2233_v42, 2  ;;  %v2279_v51 = vrot.slane %v2278_v24, 1  ;;  %v2320_v48 = vsel %vm2148_vm7, %v2318_v11, 0.0 }
0x2c91   :  { %v2165_v30 = vadd.f32 %v2164_v43, %v2163_v37  ;;  %v2211_v52 = vadd.f32 %v2210_v44, %v2209_v38  ;;  %2847 = vrcp.f32 %v2257_v45  ;;  %v2300_v49 = vrot.slane %v2299_v46, 2 }
0x2c92   :  { %v2188_v2 = vrot.slane %v2187_v8, 1  ;;  %v2235_v53 = vadd.f32 %v2234_v47, %v2233_v42  ;;  %v2280_v54 = vadd.f32 %v2279_v51, %v2278_v24  ;;  %v2321_v9 = vrot.slane %v2320_v48, 4 }
0x2c93   :  { %2849 = vrcp.f32 %v2165_v30  ;;  %v2212_v55 = vrot.slane %v2211_v52, 1  ;;  %v2301_v4 = vadd.f32 %v2300_v49, %v2299_v46 }
0x2c94   :  { %v2189_v56 = vadd.f32 %v2188_v2, %v2187_v8  ;;  %v2236_v57 = vrot.slane %v2235_v53, 1  ;;  %2851 = vrcp.f32 %v2280_v54  ;;  %v2322_v7 = vadd.f32 %v2321_v9, %v2320_v48 }
0x2c95   :  { %v2213_v58 = vadd.f32 %v2212_v55, %v2211_v52  ;;  %v2302_v59 = vrot.slane %v2301_v4, 1 }
0x2c96   :  { %2853 = vrcp.f32 %v2189_v56  ;;  %v2237_v50 = vadd.f32 %v2236_v57, %v2235_v53  ;;  %v2323_v62 = vrot.slane %v2322_v7, 2 }
0x2c97   :  { %2855 = vrcp.f32 %v2213_v58  ;;  %v2303_v1 = vadd.f32 %v2302_v59, %v2301_v4 }
0x2c98   :  { %2857 = vrcp.f32 %v2237_v50  ;;  %v2324_v6 = vadd.f32 %v2323_v62, %v2322_v7 }
0x2c99   :  { %2859 = vrcp.f32 %v2303_v1 }
0x2c9a   :  { %v2325_v12 = vrot.slane %v2324_v6, 1 }
0x2c9c   :  { %v2326_v14 = vadd.f32 %v2325_v12, %v2324_v6 }
0x2c9e   :  { %v2848_v15 = vpop.eup %2847  ;;  %2861 = vrcp.f32 %v2326_v14 }
0x2c9f   :  { %v2259_v16 = vmul.f32 %v2848_v15, %v3491_v60 }
0x2ca0   :  { %v2850_v18 = vpop.eup %2849 }
0x2ca1   :  { %v2852_v19 = vpop.eup %2851  ;;  %v2167_v21 = vmul.f32 %v2850_v18, %v3497_v61  ;;  %2260 = vst.msk [vmem:[#allocation15 + $0x8] sm:$0x3] %vm2148_vm7, %v2259_v16 }
0x2ca2   :  { %v2282_v22 = vmul.f32 %v2852_v19, %v3493_v0 }
0x2ca3   :  { %v2854_v3 = vpop.eup %2853  ;;  %2168 = vst.msk [vmem:[#allocation15] sm:$0x3] %vm2148_vm7, %v2167_v21 }
0x2ca4   :  { %v2856_v23 = vpop.eup %2855  ;;  %v2191_v25 = vmul.f32 %v2854_v3, %v3500_v5  ;;  %2283 = vst.msk [vmem:[#allocation15 + $0x8] sm:$0xc] %vm2169_vm8, %v2282_v22 }
0x2ca5   :  { %v2858_v26 = vpop.eup %2857  ;;  %v2215_v27 = vmul.f32 %v2856_v23, %v3504_v10 }
0x2ca6   :  { %v2860_v60 = vpop.eup %2859  ;;  %2192 = vst.msk [vmem:[#allocation15] sm:$0xc] %vm2169_vm8, %v2191_v25  ;;  %v2239_v61 = vmul.f32 %v2858_v26, %v3508_v17 }
0x2ca7   :  { %2216 = vst.msk [vmem:[#allocation15] sm:$0x30] %vm2193_vm9, %v2215_v27  ;;  %v2305_v0 = vmul.f32 %v2860_v60, %v3511_v20 }
0x2ca8   :  { %2240 = vst.msk [vmem:[#allocation15] sm:$0xc0] %vm2217_vm10, %v2239_v61 }
0x2ca9   :  { %2306 = vst.msk [vmem:[#allocation15 + $0x8] sm:$0x30] %vm2193_vm9, %v2305_v0 }
0x2cab   :  { %v2862_v5 = vpop.eup %2861 }
0x2cac   :  { %v2328_v28 = vmul.f32 %v2862_v5, %v3517_v13 }
0x2cae   :  { %2329 = vst.msk [vmem:[#allocation15 + $0x8] sm:$0xc0] %vm2217_vm10, %v2328_v28 }
0x2caf   :  { %2994 = shalt.err (!%p2991_p6)
}
0x2cb0   :  { %2341 = dma.vmem_to_hbm [thread:$0]  %s2336_s22, 256, %s3554_s9, [#allocation6], %s3015_s14, %s3015_s14, %s3016_s15  }
0x2cb1   :  { %3011 = dma.done.wait [#allocation6], 256  }
0x2cb2   :  { %3012 = vsyncadd [#allocation6], 4294967040 }
0x2cb3   :  { %2345 = vsyncpa [#allocation5], 1 }
0x2cb4   :  { %2346 = vsyncpa [#allocation8], 1 }
0x2cb5   :  { %2347 = vsyncpa [#allocation11], 1 }
0x2cb6   :  { %2348 = vsyncpa [#allocation14], 1 }
0x2cb7   :  { %2349 = vsyncpa [#allocation6], 1 }

</bundles_post_ra>
